<compile_context>
chip_gen: v7x
topology: tpu7x:2x2x1
jax: 0.10.0
libtpu: 0.0.40
codegen_flags: <defaults>
</compile_context>

<pallas_src>
import functools

import jax
import jax.numpy as jnp
from jax.experimental import pallas as pl
from jax.experimental.pallas import tpu as pltpu


def _fused_conv_relu_kernel(x_ref, w_ref, b_ref, o_ref, rhs_ref, *,
                            KH, KW, Wp, L, Lpad, B):
    """Implicit-GEMM conv + bias + ReLU for a block of B images.

    x_ref:   (B, C, LX)            spatially padded images, rows flattened (bf16)
    w_ref:   (Cout_pad, C*KH*KW)   merged-contraction weights (bf16)
    b_ref:   (Cout_pad, 1)         bias column, f32
    o_ref:   (B, Cout_pad, Lpad)   dense (stride-1) conv output slabs
    rhs_ref: (C*KH*KW, B*Lpad)     im2col staging scratch (VMEM, bf16)
    """
    C = x_ref.shape[1]

    # Stage the im2col RHS once: rows [t*C:(t+1)*C] hold tap t (a static
    # lane-shifted window of the flat image), lanes [b*Lpad : b*Lpad+L] hold
    # image b.  All offsets are static -> unrolled, no per-dot shift work.
    for b in range(B):
        for kh in range(KH):
            for kw in range(KW):
                t = kh * KW + kw
                off = kh * Wp + kw                       # static lane offset
                rhs_ref[t * C:(t + 1) * C, b * Lpad:b * Lpad + L] = (
                    x_ref[b, :, off:off + L])
        if Lpad > L:
            # Keep the padded tail lanes deterministic (they feed output lanes
            # that are cropped in the wrapper).
            rhs_ref[:, b * Lpad + L:(b + 1) * Lpad] = jnp.zeros(
                (rhs_ref.shape[0], Lpad - L), rhs_ref.dtype)

    # One MXU GEMM over the merged contraction K = C*KH*KW, f32 accumulate.
    acc = jnp.dot(w_ref[...], rhs_ref[...], preferred_element_type=jnp.float32)
    acc = acc + b_ref[...]                               # f32 epilogue (v5e-safe)
    y = jnp.maximum(acc, 0.0).astype(o_ref.dtype)

    # Per-image slabs are 128-lane aligned (Lpad % 128 == 0) -> dense stores.
    for b in range(B):
        o_ref[b] = y[:, b * Lpad:(b + 1) * Lpad]


def segmented_conv_forward(x, weights, biases, stride=1, padding=0,
                           compute_dtype=jnp.bfloat16, images_per_block=None):
    """x: (N, C, H, W); weights: list of (seg, C, KH, KW); biases: list of (seg,)."""
    w = jnp.concatenate(weights, axis=0)       # (Cout, C, KH, KW)
    b = jnp.concatenate(biases, axis=0)        # (Cout,)
    N, C, H, W = x.shape
    Cout, _, KH, KW = w.shape
    Hp, Wp = H + 2 * padding, W + 2 * padding
    OH = (Hp - KH) // stride + 1
    OW = (Wp - KW) // stride + 1
    OH1 = Hp - KH + 1                          # dense (stride-1) output rows
    L = OH1 * Wp                               # dense output positions per image
    Lpad = ((L + 127) // 128) * 128            # lane-dense output slab width
    Cout_pad = max(16, ((Cout + 7) // 8) * 8)  # sublane-dense GEMM M-dim
    K = C * KH * KW                            # merged contraction depth

    # Images per grid step (stacked along the GEMM lane axis).  Keep >=2 grid
    # blocks so both v7x TensorCores get work with ("parallel",).
    if images_per_block is None:
        images_per_block = max(1, min(4, N // 2))
    B = images_per_block
    NB = ((N + B - 1) // B) * B
    grid_len = NB // B

    # Single pad: conv padding plus one extra bottom row so all tap-shifted lane
    # windows stay in bounds; batch padded to a multiple of B with zero images.
    # TODO(synk): this cast+pad makes one extra HBM pass over x; for large
    # images DMA unpadded rows straight into a zero-initialized VMEM slab
    # (memory_space=pl.ANY + pltpu.make_async_copy) instead.
    xq = x.astype(compute_dtype)
    xp = jnp.pad(xq, ((0, NB - N), (0, 0),
                      (padding, padding + 1), (padding, padding)))
    LX = (Hp + 1) * Wp
    x_flat = xp.reshape(NB, C, LX)             # row-major flatten: layout-free

    # Merged-contraction weights: w_mat[o, (kh*KW+kw)*C + c] = w[o, c, kh, kw],
    # matching the im2col scratch row order; Cout zero-padded to Cout_pad.
    w_mat = jnp.transpose(w, (0, 2, 3, 1)).reshape(Cout, K)
    w_mat = jnp.pad(w_mat, ((0, Cout_pad - Cout), (0, 0))).astype(compute_dtype)
    b_col = jnp.pad(b, (0, Cout_pad - Cout)).reshape(Cout_pad, 1).astype(jnp.float32)

    kernel = functools.partial(_fused_conv_relu_kernel, KH=KH, KW=KW, Wp=Wp,
                               L=L, Lpad=Lpad, B=B)

    flops = 2 * N * Cout * C * KH * KW * OH * OW
    bytes_accessed = (x_flat.size * 2 + w_mat.size * 2 + b_col.size * 4
                      + NB * Cout_pad * Lpad * x.dtype.itemsize)

    # TODO(synk): for large H*W or C, row-tile the OH1 axis (with a KH-1 halo)
    # instead of whole-image blocks so per-step VMEM stays within v7x's budget,
    # and consider pipeline_mode=pl.Buffered(3) on the x spec for long grids.
    out_pad = pl.pallas_call(
        kernel,
        out_shape=jax.ShapeDtypeStruct((NB, Cout_pad, Lpad), x.dtype),
        grid=(grid_len,),
        in_specs=[
            pl.BlockSpec((B, C, LX), lambda n: (n, 0, 0)),          # B images/step
            pl.BlockSpec((Cout_pad, K), lambda n: (0, 0)),          # full (tiny) weights
            pl.BlockSpec((Cout_pad, 1), lambda n: (0, 0)),          # bias column
        ],
        out_specs=pl.BlockSpec((B, Cout_pad, Lpad), lambda n: (n, 0, 0)),
        scratch_shapes=[pltpu.VMEM((K, B * Lpad), compute_dtype)],  # im2col RHS
        compiler_params=pltpu.CompilerParams(
            dimension_semantics=("parallel",),
            vmem_limit_bytes=32 * 1024 * 1024),
        cost_estimate=pl.CostEstimate(flops=flops, transcendentals=0,
                                      bytes_accessed=bytes_accessed),
    )(x_flat, w_mat, b_col)

    # Drop Cout/L/batch padding, reshape to NCHW (leading-axis only, no lane
    # transpose), crop horizontal garbage columns, apply stride.
    y = out_pad[:N, :Cout, :L].reshape(N, Cout, OH1, Wp)
    # TODO(synk): for stride>1, subsample dense rows inside the kernel instead
    # of computing densely and cropping here (saves ~stride^2 FLOPs/writeback).
    y = y[:, :, ::stride, ::stride][:, :, :OH, :OW]
    return y


def _reference(x, weights, biases, stride, padding, compute_dtype):
    # Apply the same bf16 input/weight rounding as the kernel; f32 accumulate.
    w = jnp.concatenate(weights, axis=0).astype(compute_dtype).astype(jnp.float32)
    b = jnp.concatenate(biases, axis=0)
    xq = x.astype(compute_dtype).astype(jnp.float32)
    y = jax.lax.conv_general_dilated(
        xq, w, window_strides=(stride, stride),
        padding=[(padding, padding), (padding, padding)],
        dimension_numbers=("NCHW", "OIHW", "NCHW"),
        precision=jax.lax.Precision.HIGHEST)
    y = y + b[None, :, None, None]
    return jnp.maximum(y, 0.0)


if __name__ == "__main__":
    # Module config: SegmentedConv(in_channels=4, segment_size=4,
    #                              number_of_segments=3, kernel_size=3,
    #                              stride=1, padding=1)
    in_channels, segment_size, num_segments = 4, 4, 3
    kernel_size, stride, padding = 3, 1, 1
    N, H, W = 8, 16, 16   # N=8 -> 4 images per grid step, 2 grid blocks

    key = jax.random.PRNGKey(0)
    kx, *kws = jax.random.split(key, 1 + 2 * num_segments)
    x = jax.random.normal(kx, (N, in_channels, H, W), dtype=jnp.float32)

    # Deterministic per-segment Conv2d parameters (shapes as in nn.Conv2d).
    fan_in = in_channels * kernel_size * kernel_size
    bound = 1.0 / (fan_in ** 0.5)
    weights, biases = [], []
    for s in range(num_segments):
        weights.append(jax.random.uniform(
            kws[2 * s], (segment_size, in_channels, kernel_size, kernel_size),
            minval=-bound, maxval=bound, dtype=jnp.float32))
        biases.append(jax.random.uniform(
            kws[2 * s + 1], (segment_size,),
            minval=-bound, maxval=bound, dtype=jnp.float32))

    y = segmented_conv_forward(x, weights, biases, stride=stride, padding=padding)
    y = jax.block_until_ready(y)

    y_ref = _reference(x, weights, biases, stride, padding, jnp.bfloat16)
    assert y.shape == (N, segment_size * num_segments, H, W), y.shape
    err = float(jnp.max(jnp.abs(y - y_ref)))
    assert err < 1e-4, err

    print("KERNEL_OK")
</pallas_src>

<mosaic_0001>
module attributes {stable_mosaic.version = 11 : i64} {
  func.func @_fused_conv_relu_kernel(%arg0: i32, %arg1: memref<4x4x342xbf16, #tpu.memory_space<vmem>>, %arg2: memref<16x36xbf16, #tpu.memory_space<vmem>>, %arg3: memref<16x1xf32, #tpu.memory_space<vmem>>, %arg4: memref<4x16x384xf32, #tpu.memory_space<vmem>>, %arg5: memref<36x1536xbf16, #tpu.memory_space<vmem>>) attributes {dimension_semantics = [#tpu.dimension_semantics<parallel>], iteration_bounds = array<i64: 2>, scalar_prefetch = 0 : i64, scratch_operands = 1 : i64, tpu.core_type = #tpu.core_type<tc>, window_params = [{transform_indices = @transform_0, window_bounds = array<i64: 4, 4, 342>}, {pipeline_mode = #tpu.pipeline_mode<synchronous>, transform_indices = @transform_1, window_bounds = array<i64: 16, 36>}, {pipeline_mode = #tpu.pipeline_mode<synchronous>, transform_indices = @transform_2, window_bounds = array<i64: 16, 1>}, {transform_indices = @transform_3, window_bounds = array<i64: 4, 16, 384>}]} {
    %c0 = arith.constant 0 : index
    %c0_0 = arith.constant 0 : index
    %c0_1 = arith.constant 0 : index
    %0 = vector.load %arg1[%c0, %c0_0, %c0_1] : memref<4x4x342xbf16, #tpu.memory_space<vmem>>, vector<1x4x288xbf16>
    %1 = vector.shape_cast %0 : vector<1x4x288xbf16> to vector<4x288xbf16>
    %c0_2 = arith.constant 0 : index
    %c0_3 = arith.constant 0 : index
    %2 = vector.load %arg5[%c0_2, %c0_3] : memref<36x1536xbf16, #tpu.memory_space<vmem>>, vector<4x288xbf16>
    tpu.vector_store %arg5[%c0_2, %c0_3], %1 {strides = array<i32>} : memref<36x1536xbf16, #tpu.memory_space<vmem>>, vector<4x288xbf16>,
    %c0_4 = arith.constant 0 : index
    %c0_5 = arith.constant 0 : index
    %c1 = arith.constant 1 : index
    %3 = vector.load %arg1[%c0_4, %c0_5, %c1] : memref<4x4x342xbf16, #tpu.memory_space<vmem>>, vector<1x4x288xbf16>
    %4 = vector.shape_cast %3 : vector<1x4x288xbf16> to vector<4x288xbf16>
    %c4 = arith.constant 4 : index
    %c0_6 = arith.constant 0 : index
    %5 = vector.load %arg5[%c4, %c0_6] : memref<36x1536xbf16, #tpu.memory_space<vmem>>, vector<4x288xbf16>
    tpu.vector_store %arg5[%c4, %c0_6], %4 {strides = array<i32>} : memref<36x1536xbf16, #tpu.memory_space<vmem>>, vector<4x288xbf16>,
    %c0_7 = arith.constant 0 : index
    %c0_8 = arith.constant 0 : index
    %c2 = arith.constant 2 : index
    %6 = vector.load %arg1[%c0_7, %c0_8, %c2] : memref<4x4x342xbf16, #tpu.memory_space<vmem>>, vector<1x4x288xbf16>
    %7 = vector.shape_cast %6 : vector<1x4x288xbf16> to vector<4x288xbf16>
    %c8 = arith.constant 8 : index
    %c0_9 = arith.constant 0 : index
    %8 = vector.load %arg5[%c8, %c0_9] : memref<36x1536xbf16, #tpu.memory_space<vmem>>, vector<4x288xbf16>
    tpu.vector_store %arg5[%c8, %c0_9], %7 {strides = array<i32>} : memref<36x1536xbf16, #tpu.memory_space<vmem>>, vector<4x288xbf16>,
    %c0_10 = arith.constant 0 : index
    %c0_11 = arith.constant 0 : index
    %c18 = arith.constant 18 : index
    %9 = vector.load %arg1[%c0_10, %c0_11, %c18] : memref<4x4x342xbf16, #tpu.memory_space<vmem>>, vector<1x4x288xbf16>
    %10 = vector.shape_cast %9 : vector<1x4x288xbf16> to vector<4x288xbf16>
    %c12 = arith.constant 12 : index
    %c0_12 = arith.constant 0 : index
    %11 = vector.load %arg5[%c12, %c0_12] : memref<36x1536xbf16, #tpu.memory_space<vmem>>, vector<4x288xbf16>
    tpu.vector_store %arg5[%c12, %c0_12], %10 {strides = array<i32>} : memref<36x1536xbf16, #tpu.memory_space<vmem>>, vector<4x288xbf16>,
    %c0_13 = arith.constant 0 : index
    %c0_14 = arith.constant 0 : index
    %c19 = arith.constant 19 : index
    %12 = vector.load %arg1[%c0_13, %c0_14, %c19] : memref<4x4x342xbf16, #tpu.memory_space<vmem>>, vector<1x4x288xbf16>
    %13 = vector.shape_cast %12 : vector<1x4x288xbf16> to vector<4x288xbf16>
    %c16 = arith.constant 16 : index
    %c0_15 = arith.constant 0 : index
    %14 = vector.load %arg5[%c16, %c0_15] : memref<36x1536xbf16, #tpu.memory_space<vmem>>, vector<4x288xbf16>
    tpu.vector_store %arg5[%c16, %c0_15], %13 {strides = array<i32>} : memref<36x1536xbf16, #tpu.memory_space<vmem>>, vector<4x288xbf16>,
    %c0_16 = arith.constant 0 : index
    %c0_17 = arith.constant 0 : index
    %c20 = arith.constant 20 : index
    %15 = vector.load %arg1[%c0_16, %c0_17, %c20] : memref<4x4x342xbf16, #tpu.memory_space<vmem>>, vector<1x4x288xbf16>
    %16 = vector.shape_cast %15 : vector<1x4x288xbf16> to vector<4x288xbf16>
    %c20_18 = arith.constant 20 : index
    %c0_19 = arith.constant 0 : index
    %17 = vector.load %arg5[%c20_18, %c0_19] : memref<36x1536xbf16, #tpu.memory_space<vmem>>, vector<4x288xbf16>
    tpu.vector_store %arg5[%c20_18, %c0_19], %16 {strides = array<i32>} : memref<36x1536xbf16, #tpu.memory_space<vmem>>, vector<4x288xbf16>,
    %c0_20 = arith.constant 0 : index
    %c0_21 = arith.constant 0 : index
    %c36 = arith.constant 36 : index
    %18 = vector.load %arg1[%c0_20, %c0_21, %c36] : memref<4x4x342xbf16, #tpu.memory_space<vmem>>, vector<1x4x288xbf16>
    %19 = vector.shape_cast %18 : vector<1x4x288xbf16> to vector<4x288xbf16>
    %c24 = arith.constant 24 : index
    %c0_22 = arith.constant 0 : index
    %20 = vector.load %arg5[%c24, %c0_22] : memref<36x1536xbf16, #tpu.memory_space<vmem>>, vector<4x288xbf16>
    tpu.vector_store %arg5[%c24, %c0_22], %19 {strides = array<i32>} : memref<36x1536xbf16, #tpu.memory_space<vmem>>, vector<4x288xbf16>,
    %c0_23 = arith.constant 0 : index
    %c0_24 = arith.constant 0 : index
    %c37 = arith.constant 37 : index
    %21 = vector.load %arg1[%c0_23, %c0_24, %c37] : memref<4x4x342xbf16, #tpu.memory_space<vmem>>, vector<1x4x288xbf16>
    %22 = vector.shape_cast %21 : vector<1x4x288xbf16> to vector<4x288xbf16>
    %c28 = arith.constant 28 : index
    %c0_25 = arith.constant 0 : index
    %23 = vector.load %arg5[%c28, %c0_25] : memref<36x1536xbf16, #tpu.memory_space<vmem>>, vector<4x288xbf16>
    tpu.vector_store %arg5[%c28, %c0_25], %22 {strides = array<i32>} : memref<36x1536xbf16, #tpu.memory_space<vmem>>, vector<4x288xbf16>,
    %c0_26 = arith.constant 0 : index
    %c0_27 = arith.constant 0 : index
    %c38 = arith.constant 38 : index
    %24 = vector.load %arg1[%c0_26, %c0_27, %c38] : memref<4x4x342xbf16, #tpu.memory_space<vmem>>, vector<1x4x288xbf16>
    %25 = vector.shape_cast %24 : vector<1x4x288xbf16> to vector<4x288xbf16>
    %c32 = arith.constant 32 : index
    %c0_28 = arith.constant 0 : index
    %26 = vector.load %arg5[%c32, %c0_28] : memref<36x1536xbf16, #tpu.memory_space<vmem>>, vector<4x288xbf16>
    tpu.vector_store %arg5[%c32, %c0_28], %25 {strides = array<i32>} : memref<36x1536xbf16, #tpu.memory_space<vmem>>, vector<4x288xbf16>,
    %cst = arith.constant 0.000000e+00 : bf16
    %27 = vector.broadcast %cst : bf16 to vector<36x96xbf16>
    %c0_29 = arith.constant 0 : index
    %c288 = arith.constant 288 : index
    %28 = vector.load %arg5[%c0_29, %c288] : memref<36x1536xbf16, #tpu.memory_space<vmem>>, vector<36x96xbf16>
    tpu.vector_store %arg5[%c0_29, %c288], %27 {strides = array<i32>} : memref<36x1536xbf16, #tpu.memory_space<vmem>>, vector<36x96xbf16>,
    %c1_30 = arith.constant 1 : index
    %c0_31 = arith.constant 0 : index
    %c0_32 = arith.constant 0 : index
    %29 = vector.load %arg1[%c1_30, %c0_31, %c0_32] : memref<4x4x342xbf16, #tpu.memory_space<vmem>>, vector<1x4x288xbf16>
    %30 = vector.shape_cast %29 : vector<1x4x288xbf16> to vector<4x288xbf16>
    %c0_33 = arith.constant 0 : index
    %c384 = arith.constant 384 : index
    %31 = vector.load %arg5[%c0_33, %c384] : memref<36x1536xbf16, #tpu.memory_space<vmem>>, vector<4x288xbf16>
    tpu.vector_store %arg5[%c0_33, %c384], %30 {strides = array<i32>} : memref<36x1536xbf16, #tpu.memory_space<vmem>>, vector<4x288xbf16>,
    %c1_34 = arith.constant 1 : index
    %c0_35 = arith.constant 0 : index
    %c1_36 = arith.constant 1 : index
    %32 = vector.load %arg1[%c1_34, %c0_35, %c1_36] : memref<4x4x342xbf16, #tpu.memory_space<vmem>>, vector<1x4x288xbf16>
    %33 = vector.shape_cast %32 : vector<1x4x288xbf16> to vector<4x288xbf16>
    %c4_37 = arith.constant 4 : index
    %c384_38 = arith.constant 384 : index
    %34 = vector.load %arg5[%c4_37, %c384_38] : memref<36x1536xbf16, #tpu.memory_space<vmem>>, vector<4x288xbf16>
    tpu.vector_store %arg5[%c4_37, %c384_38], %33 {strides = array<i32>} : memref<36x1536xbf16, #tpu.memory_space<vmem>>, vector<4x288xbf16>,
    %c1_39 = arith.constant 1 : index
    %c0_40 = arith.constant 0 : index
    %c2_41 = arith.constant 2 : index
    %35 = vector.load %arg1[%c1_39, %c0_40, %c2_41] : memref<4x4x342xbf16, #tpu.memory_space<vmem>>, vector<1x4x288xbf16>
    %36 = vector.shape_cast %35 : vector<1x4x288xbf16> to vector<4x288xbf16>
    %c8_42 = arith.constant 8 : index
    %c384_43 = arith.constant 384 : index
    %37 = vector.load %arg5[%c8_42, %c384_43] : memref<36x1536xbf16, #tpu.memory_space<vmem>>, vector<4x288xbf16>
    tpu.vector_store %arg5[%c8_42, %c384_43], %36 {strides = array<i32>} : memref<36x1536xbf16, #tpu.memory_space<vmem>>, vector<4x288xbf16>,
    %c1_44 = arith.constant 1 : index
    %c0_45 = arith.constant 0 : index
    %c18_46 = arith.constant 18 : index
    %38 = vector.load %arg1[%c1_44, %c0_45, %c18_46] : memref<4x4x342xbf16, #tpu.memory_space<vmem>>, vector<1x4x288xbf16>
    %39 = vector.shape_cast %38 : vector<1x4x288xbf16> to vector<4x288xbf16>
    %c12_47 = arith.constant 12 : index
    %c384_48 = arith.constant 384 : index
    %40 = vector.load %arg5[%c12_47, %c384_48] : memref<36x1536xbf16, #tpu.memory_space<vmem>>, vector<4x288xbf16>
    tpu.vector_store %arg5[%c12_47, %c384_48], %39 {strides = array<i32>} : memref<36x1536xbf16, #tpu.memory_space<vmem>>, vector<4x288xbf16>,
    %c1_49 = arith.constant 1 : index
    %c0_50 = arith.constant 0 : index
    %c19_51 = arith.constant 19 : index
    %41 = vector.load %arg1[%c1_49, %c0_50, %c19_51] : memref<4x4x342xbf16, #tpu.memory_space<vmem>>, vector<1x4x288xbf16>
    %42 = vector.shape_cast %41 : vector<1x4x288xbf16> to vector<4x288xbf16>
    %c16_52 = arith.constant 16 : index
    %c384_53 = arith.constant 384 : index
    %43 = vector.load %arg5[%c16_52, %c384_53] : memref<36x1536xbf16, #tpu.memory_space<vmem>>, vector<4x288xbf16>
    tpu.vector_store %arg5[%c16_52, %c384_53], %42 {strides = array<i32>} : memref<36x1536xbf16, #tpu.memory_space<vmem>>, vector<4x288xbf16>,
    %c1_54 = arith.constant 1 : index
    %c0_55 = arith.constant 0 : index
    %c20_56 = arith.constant 20 : index
    %44 = vector.load %arg1[%c1_54, %c0_55, %c20_56] : memref<4x4x342xbf16, #tpu.memory_space<vmem>>, vector<1x4x288xbf16>
    %45 = vector.shape_cast %44 : vector<1x4x288xbf16> to vector<4x288xbf16>
    %c20_57 = arith.constant 20 : index
    %c384_58 = arith.constant 384 : index
    %46 = vector.load %arg5[%c20_57, %c384_58] : memref<36x1536xbf16, #tpu.memory_space<vmem>>, vector<4x288xbf16>
    tpu.vector_store %arg5[%c20_57, %c384_58], %45 {strides = array<i32>} : memref<36x1536xbf16, #tpu.memory_space<vmem>>, vector<4x288xbf16>,
    %c1_59 = arith.constant 1 : index
    %c0_60 = arith.constant 0 : index
    %c36_61 = arith.constant 36 : index
    %47 = vector.load %arg1[%c1_59, %c0_60, %c36_61] : memref<4x4x342xbf16, #tpu.memory_space<vmem>>, vector<1x4x288xbf16>
    %48 = vector.shape_cast %47 : vector<1x4x288xbf16> to vector<4x288xbf16>
    %c24_62 = arith.constant 24 : index
    %c384_63 = arith.constant 384 : index
    %49 = vector.load %arg5[%c24_62, %c384_63] : memref<36x1536xbf16, #tpu.memory_space<vmem>>, vector<4x288xbf16>
    tpu.vector_store %arg5[%c24_62, %c384_63], %48 {strides = array<i32>} : memref<36x1536xbf16, #tpu.memory_space<vmem>>, vector<4x288xbf16>,
    %c1_64 = arith.constant 1 : index
    %c0_65 = arith.constant 0 : index
    %c37_66 = arith.constant 37 : index
    %50 = vector.load %arg1[%c1_64, %c0_65, %c37_66] : memref<4x4x342xbf16, #tpu.memory_space<vmem>>, vector<1x4x288xbf16>
    %51 = vector.shape_cast %50 : vector<1x4x288xbf16> to vector<4x288xbf16>
    %c28_67 = arith.constant 28 : index
    %c384_68 = arith.constant 384 : index
    %52 = vector.load %arg5[%c28_67, %c384_68] : memref<36x1536xbf16, #tpu.memory_space<vmem>>, vector<4x288xbf16>
    tpu.vector_store %arg5[%c28_67, %c384_68], %51 {strides = array<i32>} : memref<36x1536xbf16, #tpu.memory_space<vmem>>, vector<4x288xbf16>,
    %c1_69 = arith.constant 1 : index
    %c0_70 = arith.constant 0 : index
    %c38_71 = arith.constant 38 : index
    %53 = vector.load %arg1[%c1_69, %c0_70, %c38_71] : memref<4x4x342xbf16, #tpu.memory_space<vmem>>, vector<1x4x288xbf16>
    %54 = vector.shape_cast %53 : vector<1x4x288xbf16> to vector<4x288xbf16>
    %c32_72 = arith.constant 32 : index
    %c384_73 = arith.constant 384 : index
    %55 = vector.load %arg5[%c32_72, %c384_73] : memref<36x1536xbf16, #tpu.memory_space<vmem>>, vector<4x288xbf16>
    tpu.vector_store %arg5[%c32_72, %c384_73], %54 {strides = array<i32>} : memref<36x1536xbf16, #tpu.memory_space<vmem>>, vector<4x288xbf16>,
    %cst_74 = arith.constant 0.000000e+00 : bf16
    %56 = vector.broadcast %cst_74 : bf16 to vector<36x96xbf16>
    %c0_75 = arith.constant 0 : index
    %c672 = arith.constant 672 : index
    %57 = vector.load %arg5[%c0_75, %c672] : memref<36x1536xbf16, #tpu.memory_space<vmem>>, vector<36x96xbf16>
    tpu.vector_store %arg5[%c0_75, %c672], %56 {strides = array<i32>} : memref<36x1536xbf16, #tpu.memory_space<vmem>>, vector<36x96xbf16>,
    %c2_76 = arith.constant 2 : index
    %c0_77 = arith.constant 0 : index
    %c0_78 = arith.constant 0 : index
    %58 = vector.load %arg1[%c2_76, %c0_77, %c0_78] : memref<4x4x342xbf16, #tpu.memory_space<vmem>>, vector<1x4x288xbf16>
    %59 = vector.shape_cast %58 : vector<1x4x288xbf16> to vector<4x288xbf16>
    %c0_79 = arith.constant 0 : index
    %c768 = arith.constant 768 : index
    %60 = vector.load %arg5[%c0_79, %c768] : memref<36x1536xbf16, #tpu.memory_space<vmem>>, vector<4x288xbf16>
    tpu.vector_store %arg5[%c0_79, %c768], %59 {strides = array<i32>} : memref<36x1536xbf16, #tpu.memory_space<vmem>>, vector<4x288xbf16>,
    %c2_80 = arith.constant 2 : index
    %c0_81 = arith.constant 0 : index
    %c1_82 = arith.constant 1 : index
    %61 = vector.load %arg1[%c2_80, %c0_81, %c1_82] : memref<4x4x342xbf16, #tpu.memory_space<vmem>>, vector<1x4x288xbf16>
    %62 = vector.shape_cast %61 : vector<1x4x288xbf16> to vector<4x288xbf16>
    %c4_83 = arith.constant 4 : index
    %c768_84 = arith.constant 768 : index
    %63 = vector.load %arg5[%c4_83, %c768_84] : memref<36x1536xbf16, #tpu.memory_space<vmem>>, vector<4x288xbf16>
    tpu.vector_store %arg5[%c4_83, %c768_84], %62 {strides = array<i32>} : memref<36x1536xbf16, #tpu.memory_space<vmem>>, vector<4x288xbf16>,
    %c2_85 = arith.constant 2 : index
    %c0_86 = arith.constant 0 : index
    %c2_87 = arith.constant 2 : index
    %64 = vector.load %arg1[%c2_85, %c0_86, %c2_87] : memref<4x4x342xbf16, #tpu.memory_space<vmem>>, vector<1x4x288xbf16>
    %65 = vector.shape_cast %64 : vector<1x4x288xbf16> to vector<4x288xbf16>
    %c8_88 = arith.constant 8 : index
    %c768_89 = arith.constant 768 : index
    %66 = vector.load %arg5[%c8_88, %c768_89] : memref<36x1536xbf16, #tpu.memory_space<vmem>>, vector<4x288xbf16>
    tpu.vector_store %arg5[%c8_88, %c768_89], %65 {strides = array<i32>} : memref<36x1536xbf16, #tpu.memory_space<vmem>>, vector<4x288xbf16>,
    %c2_90 = arith.constant 2 : index
    %c0_91 = arith.constant 0 : index
    %c18_92 = arith.constant 18 : index
    %67 = vector.load %arg1[%c2_90, %c0_91, %c18_92] : memref<4x4x342xbf16, #tpu.memory_space<vmem>>, vector<1x4x288xbf16>
    %68 = vector.shape_cast %67 : vector<1x4x288xbf16> to vector<4x288xbf16>
    %c12_93 = arith.constant 12 : index
    %c768_94 = arith.constant 768 : index
    %69 = vector.load %arg5[%c12_93, %c768_94] : memref<36x1536xbf16, #tpu.memory_space<vmem>>, vector<4x288xbf16>
    tpu.vector_store %arg5[%c12_93, %c768_94], %68 {strides = array<i32>} : memref<36x1536xbf16, #tpu.memory_space<vmem>>, vector<4x288xbf16>,
    %c2_95 = arith.constant 2 : index
    %c0_96 = arith.constant 0 : index
    %c19_97 = arith.constant 19 : index
    %70 = vector.load %arg1[%c2_95, %c0_96, %c19_97] : memref<4x4x342xbf16, #tpu.memory_space<vmem>>, vector<1x4x288xbf16>
    %71 = vector.shape_cast %70 : vector<1x4x288xbf16> to vector<4x288xbf16>
    %c16_98 = arith.constant 16 : index
    %c768_99 = arith.constant 768 : index
    %72 = vector.load %arg5[%c16_98, %c768_99] : memref<36x1536xbf16, #tpu.memory_space<vmem>>, vector<4x288xbf16>
    tpu.vector_store %arg5[%c16_98, %c768_99], %71 {strides = array<i32>} : memref<36x1536xbf16, #tpu.memory_space<vmem>>, vector<4x288xbf16>,
    %c2_100 = arith.constant 2 : index
    %c0_101 = arith.constant 0 : index
    %c20_102 = arith.constant 20 : index
    %73 = vector.load %arg1[%c2_100, %c0_101, %c20_102] : memref<4x4x342xbf16, #tpu.memory_space<vmem>>, vector<1x4x288xbf16>
    %74 = vector.shape_cast %73 : vector<1x4x288xbf16> to vector<4x288xbf16>
    %c20_103 = arith.constant 20 : index
    %c768_104 = arith.constant 768 : index
    %75 = vector.load %arg5[%c20_103, %c768_104] : memref<36x1536xbf16, #tpu.memory_space<vmem>>, vector<4x288xbf16>
    tpu.vector_store %arg5[%c20_103, %c768_104], %74 {strides = array<i32>} : memref<36x1536xbf16, #tpu.memory_space<vmem>>, vector<4x288xbf16>,
    %c2_105 = arith.constant 2 : index
    %c0_106 = arith.constant 0 : index
    %c36_107 = arith.constant 36 : index
    %76 = vector.load %arg1[%c2_105, %c0_106, %c36_107] : memref<4x4x342xbf16, #tpu.memory_space<vmem>>, vector<1x4x288xbf16>
    %77 = vector.shape_cast %76 : vector<1x4x288xbf16> to vector<4x288xbf16>
    %c24_108 = arith.constant 24 : index
    %c768_109 = arith.constant 768 : index
    %78 = vector.load %arg5[%c24_108, %c768_109] : memref<36x1536xbf16, #tpu.memory_space<vmem>>, vector<4x288xbf16>
    tpu.vector_store %arg5[%c24_108, %c768_109], %77 {strides = array<i32>} : memref<36x1536xbf16, #tpu.memory_space<vmem>>, vector<4x288xbf16>,
    %c2_110 = arith.constant 2 : index
    %c0_111 = arith.constant 0 : index
    %c37_112 = arith.constant 37 : index
    %79 = vector.load %arg1[%c2_110, %c0_111, %c37_112] : memref<4x4x342xbf16, #tpu.memory_space<vmem>>, vector<1x4x288xbf16>
    %80 = vector.shape_cast %79 : vector<1x4x288xbf16> to vector<4x288xbf16>
    %c28_113 = arith.constant 28 : index
    %c768_114 = arith.constant 768 : index
    %81 = vector.load %arg5[%c28_113, %c768_114] : memref<36x1536xbf16, #tpu.memory_space<vmem>>, vector<4x288xbf16>
    tpu.vector_store %arg5[%c28_113, %c768_114], %80 {strides = array<i32>} : memref<36x1536xbf16, #tpu.memory_space<vmem>>, vector<4x288xbf16>,
    %c2_115 = arith.constant 2 : index
    %c0_116 = arith.constant 0 : index
    %c38_117 = arith.constant 38 : index
    %82 = vector.load %arg1[%c2_115, %c0_116, %c38_117] : memref<4x4x342xbf16, #tpu.memory_space<vmem>>, vector<1x4x288xbf16>
    %83 = vector.shape_cast %82 : vector<1x4x288xbf16> to vector<4x288xbf16>
    %c32_118 = arith.constant 32 : index
    %c768_119 = arith.constant 768 : index
    %84 = vector.load %arg5[%c32_118, %c768_119] : memref<36x1536xbf16, #tpu.memory_space<vmem>>, vector<4x288xbf16>
    tpu.vector_store %arg5[%c32_118, %c768_119], %83 {strides = array<i32>} : memref<36x1536xbf16, #tpu.memory_space<vmem>>, vector<4x288xbf16>,
    %cst_120 = arith.constant 0.000000e+00 : bf16
    %85 = vector.broadcast %cst_120 : bf16 to vector<36x96xbf16>
    %c0_121 = arith.constant 0 : index
    %c1056 = arith.constant 1056 : index
    %86 = vector.load %arg5[%c0_121, %c1056] : memref<36x1536xbf16, #tpu.memory_space<vmem>>, vector<36x96xbf16>
    tpu.vector_store %arg5[%c0_121, %c1056], %85 {strides = array<i32>} : memref<36x1536xbf16, #tpu.memory_space<vmem>>, vector<36x96xbf16>,
    %c3 = arith.constant 3 : index
    %c0_122 = arith.constant 0 : index
    %c0_123 = arith.constant 0 : index
    %87 = vector.load %arg1[%c3, %c0_122, %c0_123] : memref<4x4x342xbf16, #tpu.memory_space<vmem>>, vector<1x4x288xbf16>
    %88 = vector.shape_cast %87 : vector<1x4x288xbf16> to vector<4x288xbf16>
    %c0_124 = arith.constant 0 : index
    %c1152 = arith.constant 1152 : index
    %89 = vector.load %arg5[%c0_124, %c1152] : memref<36x1536xbf16, #tpu.memory_space<vmem>>, vector<4x288xbf16>
    tpu.vector_store %arg5[%c0_124, %c1152], %88 {strides = array<i32>} : memref<36x1536xbf16, #tpu.memory_space<vmem>>, vector<4x288xbf16>,
    %c3_125 = arith.constant 3 : index
    %c0_126 = arith.constant 0 : index
    %c1_127 = arith.constant 1 : index
    %90 = vector.load %arg1[%c3_125, %c0_126, %c1_127] : memref<4x4x342xbf16, #tpu.memory_space<vmem>>, vector<1x4x288xbf16>
    %91 = vector.shape_cast %90 : vector<1x4x288xbf16> to vector<4x288xbf16>
    %c4_128 = arith.constant 4 : index
    %c1152_129 = arith.constant 1152 : index
    %92 = vector.load %arg5[%c4_128, %c1152_129] : memref<36x1536xbf16, #tpu.memory_space<vmem>>, vector<4x288xbf16>
    tpu.vector_store %arg5[%c4_128, %c1152_129], %91 {strides = array<i32>} : memref<36x1536xbf16, #tpu.memory_space<vmem>>, vector<4x288xbf16>,
    %c3_130 = arith.constant 3 : index
    %c0_131 = arith.constant 0 : index
    %c2_132 = arith.constant 2 : index
    %93 = vector.load %arg1[%c3_130, %c0_131, %c2_132] : memref<4x4x342xbf16, #tpu.memory_space<vmem>>, vector<1x4x288xbf16>
    %94 = vector.shape_cast %93 : vector<1x4x288xbf16> to vector<4x288xbf16>
    %c8_133 = arith.constant 8 : index
    %c1152_134 = arith.constant 1152 : index
    %95 = vector.load %arg5[%c8_133, %c1152_134] : memref<36x1536xbf16, #tpu.memory_space<vmem>>, vector<4x288xbf16>
    tpu.vector_store %arg5[%c8_133, %c1152_134], %94 {strides = array<i32>} : memref<36x1536xbf16, #tpu.memory_space<vmem>>, vector<4x288xbf16>,
    %c3_135 = arith.constant 3 : index
    %c0_136 = arith.constant 0 : index
    %c18_137 = arith.constant 18 : index
    %96 = vector.load %arg1[%c3_135, %c0_136, %c18_137] : memref<4x4x342xbf16, #tpu.memory_space<vmem>>, vector<1x4x288xbf16>
    %97 = vector.shape_cast %96 : vector<1x4x288xbf16> to vector<4x288xbf16>
    %c12_138 = arith.constant 12 : index
    %c1152_139 = arith.constant 1152 : index
    %98 = vector.load %arg5[%c12_138, %c1152_139] : memref<36x1536xbf16, #tpu.memory_space<vmem>>, vector<4x288xbf16>
    tpu.vector_store %arg5[%c12_138, %c1152_139], %97 {strides = array<i32>} : memref<36x1536xbf16, #tpu.memory_space<vmem>>, vector<4x288xbf16>,
    %c3_140 = arith.constant 3 : index
    %c0_141 = arith.constant 0 : index
    %c19_142 = arith.constant 19 : index
    %99 = vector.load %arg1[%c3_140, %c0_141, %c19_142] : memref<4x4x342xbf16, #tpu.memory_space<vmem>>, vector<1x4x288xbf16>
    %100 = vector.shape_cast %99 : vector<1x4x288xbf16> to vector<4x288xbf16>
    %c16_143 = arith.constant 16 : index
    %c1152_144 = arith.constant 1152 : index
    %101 = vector.load %arg5[%c16_143, %c1152_144] : memref<36x1536xbf16, #tpu.memory_space<vmem>>, vector<4x288xbf16>
    tpu.vector_store %arg5[%c16_143, %c1152_144], %100 {strides = array<i32>} : memref<36x1536xbf16, #tpu.memory_space<vmem>>, vector<4x288xbf16>,
    %c3_145 = arith.constant 3 : index
    %c0_146 = arith.constant 0 : index
    %c20_147 = arith.constant 20 : index
    %102 = vector.load %arg1[%c3_145, %c0_146, %c20_147] : memref<4x4x342xbf16, #tpu.memory_space<vmem>>, vector<1x4x288xbf16>
    %103 = vector.shape_cast %102 : vector<1x4x288xbf16> to vector<4x288xbf16>
    %c20_148 = arith.constant 20 : index
    %c1152_149 = arith.constant 1152 : index
    %104 = vector.load %arg5[%c20_148, %c1152_149] : memref<36x1536xbf16, #tpu.memory_space<vmem>>, vector<4x288xbf16>
    tpu.vector_store %arg5[%c20_148, %c1152_149], %103 {strides = array<i32>} : memref<36x1536xbf16, #tpu.memory_space<vmem>>, vector<4x288xbf16>,
    %c3_150 = arith.constant 3 : index
    %c0_151 = arith.constant 0 : index
    %c36_152 = arith.constant 36 : index
    %105 = vector.load %arg1[%c3_150, %c0_151, %c36_152] : memref<4x4x342xbf16, #tpu.memory_space<vmem>>, vector<1x4x288xbf16>
    %106 = vector.shape_cast %105 : vector<1x4x288xbf16> to vector<4x288xbf16>
    %c24_153 = arith.constant 24 : index
    %c1152_154 = arith.constant 1152 : index
    %107 = vector.load %arg5[%c24_153, %c1152_154] : memref<36x1536xbf16, #tpu.memory_space<vmem>>, vector<4x288xbf16>
    tpu.vector_store %arg5[%c24_153, %c1152_154], %106 {strides = array<i32>} : memref<36x1536xbf16, #tpu.memory_space<vmem>>, vector<4x288xbf16>,
    %c3_155 = arith.constant 3 : index
    %c0_156 = arith.constant 0 : index
    %c37_157 = arith.constant 37 : index
    %108 = vector.load %arg1[%c3_155, %c0_156, %c37_157] : memref<4x4x342xbf16, #tpu.memory_space<vmem>>, vector<1x4x288xbf16>
    %109 = vector.shape_cast %108 : vector<1x4x288xbf16> to vector<4x288xbf16>
    %c28_158 = arith.constant 28 : index
    %c1152_159 = arith.constant 1152 : index
    %110 = vector.load %arg5[%c28_158, %c1152_159] : memref<36x1536xbf16, #tpu.memory_space<vmem>>, vector<4x288xbf16>
    tpu.vector_store %arg5[%c28_158, %c1152_159], %109 {strides = array<i32>} : memref<36x1536xbf16, #tpu.memory_space<vmem>>, vector<4x288xbf16>,
    %c3_160 = arith.constant 3 : index
    %c0_161 = arith.constant 0 : index
    %c38_162 = arith.constant 38 : index
    %111 = vector.load %arg1[%c3_160, %c0_161, %c38_162] : memref<4x4x342xbf16, #tpu.memory_space<vmem>>, vector<1x4x288xbf16>
    %112 = vector.shape_cast %111 : vector<1x4x288xbf16> to vector<4x288xbf16>
    %c32_163 = arith.constant 32 : index
    %c1152_164 = arith.constant 1152 : index
    %113 = vector.load %arg5[%c32_163, %c1152_164] : memref<36x1536xbf16, #tpu.memory_space<vmem>>, vector<4x288xbf16>
    tpu.vector_store %arg5[%c32_163, %c1152_164], %112 {strides = array<i32>} : memref<36x1536xbf16, #tpu.memory_space<vmem>>, vector<4x288xbf16>,
    %cst_165 = arith.constant 0.000000e+00 : bf16
    %114 = vector.broadcast %cst_165 : bf16 to vector<36x96xbf16>
    %c0_166 = arith.constant 0 : index
    %c1440 = arith.constant 1440 : index
    %115 = vector.load %arg5[%c0_166, %c1440] : memref<36x1536xbf16, #tpu.memory_space<vmem>>, vector<36x96xbf16>
    tpu.vector_store %arg5[%c0_166, %c1440], %114 {strides = array<i32>} : memref<36x1536xbf16, #tpu.memory_space<vmem>>, vector<36x96xbf16>,
    %c0_167 = arith.constant 0 : index
    %c0_168 = arith.constant 0 : index
    %116 = vector.load %arg2[%c0_167, %c0_168] : memref<16x36xbf16, #tpu.memory_space<vmem>>, vector<16x36xbf16>
    %c0_169 = arith.constant 0 : index
    %c0_170 = arith.constant 0 : index
    %117 = vector.load %arg5[%c0_169, %c0_170] : memref<36x1536xbf16, #tpu.memory_space<vmem>>, vector<36x1536xbf16>
    %cst_171 = arith.constant dense<0.000000e+00> : vector<16x1536xf32>
    %118 = tpu.matmul %116, %117, %cst_171 {dimension_numbers = #tpu.dot_dimension_numbers<[1], [0], [0], [1], [0, 0, 1, 1], [], []>} : vector<16x36xbf16>, vector<36x1536xbf16>, vector<16x1536xf32> -> vector<16x1536xf32>
    %c0_172 = arith.constant 0 : index
    %c0_173 = arith.constant 0 : index
    %119 = vector.load %arg3[%c0_172, %c0_173] : memref<16x1xf32, #tpu.memory_space<vmem>>, vector<16x1xf32>
    %120 = vector.broadcast %119 : vector<16x1xf32> to vector<16x1536xf32>
    %121 = arith.addf %118, %120 : vector<16x1536xf32>
    %cst_174 = arith.constant 0.000000e+00 : f32
    %122 = vector.broadcast %cst_174 : f32 to vector<16x1536xf32>
    %123 = arith.maximumf %121, %122 : vector<16x1536xf32>
    %124 = vector.extract_strided_slice %123 {offsets = [0, 0], sizes = [16, 384], strides = [1, 1]} : vector<16x1536xf32> to vector<16x384xf32>
    %c0_175 = arith.constant 0 : index
    %c0_176 = arith.constant 0 : index
    %c0_177 = arith.constant 0 : index
    %125 = vector.load %arg4[%c0_175, %c0_176, %c0_177] : memref<4x16x384xf32, #tpu.memory_space<vmem>>, vector<1x16x384xf32>
    %126 = vector.shape_cast %125 : vector<1x16x384xf32> to vector<16x384xf32>
    %127 = vector.shape_cast %124 : vector<16x384xf32> to vector<1x16x384xf32>
    tpu.vector_store %arg4[%c0_175, %c0_176, %c0_177], %127 {strides = array<i32>} : memref<4x16x384xf32, #tpu.memory_space<vmem>>, vector<1x16x384xf32>,
    %128 = vector.extract_strided_slice %123 {offsets = [0, 384], sizes = [16, 384], strides = [1, 1]} : vector<16x1536xf32> to vector<16x384xf32>
    %c1_178 = arith.constant 1 : index
    %c0_179 = arith.constant 0 : index
    %c0_180 = arith.constant 0 : index
    %129 = vector.load %arg4[%c1_178, %c0_179, %c0_180] : memref<4x16x384xf32, #tpu.memory_space<vmem>>, vector<1x16x384xf32>
    %130 = vector.shape_cast %129 : vector<1x16x384xf32> to vector<16x384xf32>
    %131 = vector.shape_cast %128 : vector<16x384xf32> to vector<1x16x384xf32>
    tpu.vector_store %arg4[%c1_178, %c0_179, %c0_180], %131 {strides = array<i32>} : memref<4x16x384xf32, #tpu.memory_space<vmem>>, vector<1x16x384xf32>,
    %132 = vector.extract_strided_slice %123 {offsets = [0, 768], sizes = [16, 384], strides = [1, 1]} : vector<16x1536xf32> to vector<16x384xf32>
    %c2_181 = arith.constant 2 : index
    %c0_182 = arith.constant 0 : index
    %c0_183 = arith.constant 0 : index
    %133 = vector.load %arg4[%c2_181, %c0_182, %c0_183] : memref<4x16x384xf32, #tpu.memory_space<vmem>>, vector<1x16x384xf32>
    %134 = vector.shape_cast %133 : vector<1x16x384xf32> to vector<16x384xf32>
    %135 = vector.shape_cast %132 : vector<16x384xf32> to vector<1x16x384xf32>
    tpu.vector_store %arg4[%c2_181, %c0_182, %c0_183], %135 {strides = array<i32>} : memref<4x16x384xf32, #tpu.memory_space<vmem>>, vector<1x16x384xf32>,
    %136 = vector.extract_strided_slice %123 {offsets = [0, 1152], sizes = [16, 384], strides = [1, 1]} : vector<16x1536xf32> to vector<16x384xf32>
    %c3_184 = arith.constant 3 : index
    %c0_185 = arith.constant 0 : index
    %c0_186 = arith.constant 0 : index
    %137 = vector.load %arg4[%c3_184, %c0_185, %c0_186] : memref<4x16x384xf32, #tpu.memory_space<vmem>>, vector<1x16x384xf32>
    %138 = vector.shape_cast %137 : vector<1x16x384xf32> to vector<16x384xf32>
    %139 = vector.shape_cast %136 : vector<16x384xf32> to vector<1x16x384xf32>
    tpu.vector_store %arg4[%c3_184, %c0_185, %c0_186], %139 {strides = array<i32>} : memref<4x16x384xf32, #tpu.memory_space<vmem>>, vector<1x16x384xf32>,
    return
  }
  func.func @transform_0(%arg0: i32) -> (i32, i32, i32) {
    %c0_i32 = arith.constant 0 : i32
    %c0_i32_0 = arith.constant 0 : i32
    %c0_i32_1 = arith.constant 0 : i32
    return %arg0, %c0_i32, %c0_i32_0 : i32, i32, i32
  }
  func.func @transform_1(%arg0: i32) -> (i32, i32) {
    %c0_i32 = arith.constant 0 : i32
    %c0_i32_0 = arith.constant 0 : i32
    %c0_i32_1 = arith.constant 0 : i32
    return %c0_i32, %c0_i32_0 : i32, i32
  }
  func.func @transform_2(%arg0: i32) -> (i32, i32) {
    %c0_i32 = arith.constant 0 : i32
    %c0_i32_0 = arith.constant 0 : i32
    %c0_i32_1 = arith.constant 0 : i32
    return %c0_i32, %c0_i32_0 : i32, i32
  }
  func.func @transform_3(%arg0: i32) -> (i32, i32, i32) {
    %c0_i32 = arith.constant 0 : i32
    %c0_i32_0 = arith.constant 0 : i32
    %c0_i32_1 = arith.constant 0 : i32
    return %arg0, %c0_i32, %c0_i32_0 : i32, i32, i32
  }
}

</mosaic_0001>

<bundles_post_ra>
// kernel: tpu_custom_call.1
= control target key start
LH: loop header
LB: loop body
LE: loop exit
PB: predicated region body
PF: predicated region fallthrough
CT: control target
= control target key end

     0   :  { %8 = vsyncpa [#allocation4], 0  ;;  %s2833_s0 = inlined_call_operand.hbm [shape: bf16[8,4,342], index: 0, kind: input, shape index: {}]   ;;  %s2834_s1 = inlined_call_operand.vmem [shape: bf16[16,36], index: 1, kind: input, shape index: {}]   ;;  %s2835_s2 = inlined_call_operand.vmem [shape: f32[16,1], index: 2, kind: input, shape index: {}]   ;;  %s2836_s3 = inlined_call_operand.hbm [shape: f32[8,16,384], index: 3, kind: output, shape index: {}]  }
   0x1   :  { %10 = vsyncpa [#allocation4 + $0x1], 0 }
   0x2   :  { %11 = vsyncpa [#allocation5], 0 }
   0x3   :  { %13 = vsyncpa [#allocation5 + $0x1], 0  ;;  %s2266_s12 = smov 0   ;;  %s2268_s13 = smov 0  }
   0x4   :  { %s2270_s14 = smov 0   ;;  %s2272_s15 = smov 0  }
   0x5 LB: > { %s2287_s16 = sadd.s32 4294967295, %s2228_s15   ;;  %s1878_s17 = sadd.s32 4294967294, %s2228_s15   ;;  %s2228_s15 = sphi %s2272_s15, %s2848_s15   ;;  %s2224_s14 = sphi %s2270_s14, %s2847_s14   ;;  %s2220_s13 = sphi %s2268_s13, %s2846_s13   ;;  %s2216_s12 = sphi %s2266_s12, %s2845_s12  }
   0x6   : > { %s2291_s18 = sadd.s32 1, %s2228_s15   ;;  %s26_s19 = sadd.s32 1, %s2224_s14 }
   0x7   : > { %s23_s20 = ssub.s32 %s2228_s15, %s2291_s18  ;;  %p33_p0 = scmp.ne.s32.totalorder %s2224_s14, %s2220_s13 }
   0x8   : > { %p24_p1 = scmp.eq.s32.totalorder %s23_s20, 0  ;;  %p34_p2 = scmp.eq.s32.totalorder %s2228_s15, 0 }
   0x9   : > { %p39_p3 = scmp.ne.s32.totalorder %s2220_s13, %s2216_s12  ;;  %p40_p4 = scmp.eq.s32.totalorder %s2287_s16, 0 }
   0xa   : > { %s2303_s21 = scalar_select %p24_p1, %s2224_s14, %s26_s19  }
   0xb   : > { %p35_p5 = por %p34_p2, %p33_p0  ;;  %p2305_p6 = por %p40_p4, %p39_p3 }
   0xc   : > { %p105_p7 = scmp.eq.s32.totalorder %s2287_s16, 1  ;;  %p111_p8 = scmp.eq.s32.totalorder %s1878_s17, 1 }
   0xd   : > { %p2005_p10 = scmp.lt.s32.totalorder %s2228_s15, 2  ;;  %s137_s25 = sand.u32 1, %s2224_s14  }
   0xe   : > { %p2312_p11 = por %p105_p7, %p33_p0  ;;  %p2316_p12 = por %p111_p8, %p39_p3 }
   0xf   : > { %s1989_s26 = smul.u32 384, %s2228_s15  ;;  %p2327_p13 = pnand %p2005_p10, %p35_p5 }
  0x10   : > { %s2839_s23 = scalar_select %p2312_p11, 1, 0 }
  0x11   : > { %s2840_s24 = scalar_select %p2316_p12, 1, 0 }
  0x12   : > { %s1988_s27 = smul.u32 24, %s137_s25  ;;  %s2325_s30 = scalar_lea.hbm %s2833_s0, %s1989_s26 }
  0x13   : > { %s2333_s7 = scalar_lea.sflag [#allocation4], %s137_s25  ;;  %s2132_s8 = scalar_lea.hbm %s2325_s30, 384 }
  0x14   : > { %s141_s5 = scalar_lea.vmem [#allocation3], %s1988_s27  ;;  %p2133_p0 = scmp.ne.s32.totalorder %s2325_s30, %s2132_s8 }
  0x15   : > { %s149_s6 = sshll.u32 %s141_s5, 4  ;;  %p2134_p1 = pneg %p2327_p13  ;;  %s2331_s6 = int_to_ptr.vmem [resolvable:$true] %s149_s6 }
  0x16   : > { %s2137_s11 = scalar_lea.hbm %s2833_s0, 768  ;;  %p2138_p4 = scmp.lt.u32.totalorder %s2325_s30, %s2833_s0 }
  0x17   : > { %p2135_p2 = pnand %p2134_p1, %p2133_p0  ;;  %p2139_p5 = scmp.lt.u32.totalorder %s2137_s11, %s2132_s8 }
  0x18   : > { %p2141_p8 = scmp.lt.u32.totalorder %s2132_s8, %s2325_s30 }
  0x19   : > { %p2136_p3 = pneg %p2135_p2  ;;  %p2140_p7 = por %p2139_p5, %p2138_p4 }
  0x1b   : > { %p2142_p10 = por %p2141_p8, %p2140_p7 }
  0x1d   : > { %p2143_p9 = pnand %p2142_p10, %p2136_p3 }
  0x1f   : > { %2146 = shalt.err (!%p2143_p9)
}
  0x20   : > { %s2147_s20 = scalar_lea.vmem %s2331_s6, 384  ;;  %s2230_s25 = smov [#allocation3]  }
  0x21   : > { %p2148_p0 = scmp.ne.s32.totalorder %s2331_s6, %s2147_s20  ;;  %s2152_s26 = sshll.u32 %s2230_s25, 4  ;;  %s2153_s26 = int_to_ptr.vmem [resolvable:$false] %s2152_s26 }
  0x22   : > { %s2154_s27 = scalar_lea.vmem %s2153_s26, 768  ;;  %p2155_p11 = scmp.lt.s32.totalorder %s2331_s6, %s2153_s26 }
  0x23   : > { %p2150_p2 = pnand %p2148_p0, %p2134_p1  ;;  %p2156_p4 = scmp.lt.s32.totalorder %s2154_s27, %s2147_s20 }
  0x25   : > { %p2151_p12 = pneg %p2150_p2  ;;  %p2157_p5 = por %p2156_p4, %p2155_p11 }
  0x27   : > { %p2158_p7 = pnand %p2157_p5, %p2151_p12 }
  0x29   : > { %2161 = shalt.err (!%p2158_p7)
}
  0x2a   : > { %s2231_s28 = smov 96   ;;  %s2232_s29 = smov 6  }
  0x2b   : > { %2000 = dma.hbm_to_vmem [thread:$0]  (!%p2327_p13), %s2325_s30, 384, %s2331_s6, %s2333_s7, %s2231_s28, %s2231_s28, %s2232_s29  }
  0x2c   : > { %p1884_p9 = scmp.ge.s32.totalorder %s2228_s15, 1  ;;  %p157_p1 = scmp.lt.s32.totalorder %s2228_s15, 3 }
  0x2e   : > { %p158_p3 = pnand %p1884_p9, %p157_p1 }
  0x2f   : > { %s2364_s5 = sand.u32 (!%p158_p3), 1, %s2220_s13  }
  0x30   : > { %161 = sbr.rel (%p158_p3) target bundleno = 556 (0x22c), region = 32  ;;  %s164_s9 = scalar_lea.sflag (!%p158_p3), [#allocation4], %s2364_s5 }
  0x31   : > { %s1990_s8 = smul.u32 (!%p158_p3), 24, %s2364_s5 }
  0x33   : > { %s2368_s10 = scalar_lea.vmem (!%p158_p3), [#allocation3], %s1990_s8 }
  0x37   : > { %2207 = dma.done.wait (%p2305_p6), %s164_s9, 384  }
  0x38   : > { %2209 = vsyncadd (%p2305_p6), %s164_s9, 4294966912  ;;  %v206_v0 = vlaneseq  ;;  %v2233_v1 = vmov 1983009808   ;;  %v2234_v4 = vmov 0   ;;  %v247_v7 = vld [vmem:[%s2368_s10] sm:$0x3f] }
  0x39   : > { %v204_v2 = vunpack.c.l.s4 %v2233_v1  ;;  %1513 = vmatprep.mubr.bf16.mxu0 %v2234_v4  ;;  %1556 = vmatprep.mubr.bf16.mxu1 %v2234_v4  ;;  %v215_v8 = vld [vmem:[%s2368_s10] sm:$0x3f]  ;;  %s2235_s22 = smov 126   ;;  %s2236_s30 = smov 127   ;;  %v1888_v16 = vld [vmem:[%s2368_s10 + $0x6] sm:$0x3f]  ;;  %v249_v17 = vcombine.high %v247_v7, %v247_v7 }
  0x3a   : > { %v207_v3 = vshrl.u32 %v206_v0, 7  ;;  %2054 = vset.pattern.permute.xlu1 %v2234_v4  ;;  %2053 = vset.pattern.permute.xlu0 %v2234_v4  ;;  %v277_v9 = vld [vmem:[%s2368_s10] sm:$0x3f]  ;;  %v217_v12 = vcombine.low %v215_v8, %v215_v8  ;;  %s2237_s4 = smov 110   ;;  %v488_v20 = vcombine.low %v1888_v16, %v1888_v16  ;;  %v1889_v21 = vld [vmem:[%s2368_s10 + $0x6] sm:$0x3f] }
  0x3b   : > { %v205_v5 = vunpack.c.0.s8 %v204_v2  ;;  %v279_v15 = vcombine.low %v277_v9, %v277_v9  ;;  %v193_v22 = vld [vmem:[%s2368_s10] sm:$0x3f]  ;;  %v517_v25 = vcombine.high %v1889_v21, %v1889_v21  ;;  %v1886_v26 = vld [vmem:[%s2368_s10 + $0x6] sm:$0x3f]  ;;  %s2238_s6 = smov 109   ;;  %vm213_vm0 = vcmask 254976  }
  0x3c   : > { %1885 = vst.sshfl [vmem:[#allocation2] sm:$0xf pattern:$0x76325410] %v193_v22  ;;  %v1890_v27 = vld [vmem:[%s2368_s10 + $0x6] sm:$0x3f]  ;;  %v195_v40 = vcombine.high %v193_v22, %v193_v22  ;;  %v467_v41 = vcombine.high %v1886_v26, %v1886_v26 }
  0x3d   : > { %v2378_v6 = vsub.s32 %v205_v5, %v207_v3  ;;  %1887 = vst.sshfl [vmem:[#allocation2 + $0xc] sm:$0xf pattern:$0x76325410] %v1886_v26  ;;  %v546_v30 = vcombine.low %v1890_v27, %v1890_v27  ;;  %v307_v31 = vld [vmem:[%s2368_s10] sm:$0x3f] }
  0x3e   : > { %v309_v34 = vcombine.high %v307_v31, %v307_v31  ;;  %v337_v35 = vld [vmem:[%s2368_s10] sm:$0x3f]  ;;  %s2239_s7 = smov 108   ;;  %v1891_v51 = vld [vmem:[%s2368_s10 + $0x6] sm:$0x3f]  ;;  %s2240_s11 = smov 92  }
  0x3f   : > { %v256_v10 = vrot.slane %v247_v7, %v2378_v6  ;;  %v231_v11 = vrot.slane %v215_v8, %v2378_v6  ;;  %v293_v13 = vrot.slane %v277_v9, %v2378_v6  ;;  %v224_v14 = vrot.slane %v217_v12, %v2378_v6  ;;  %v367_v39 = vld [vmem:[%s2368_s10] sm:$0x3f]  ;;  %v1892_v55 = vld [vmem:[%s2368_s10 + $0x6] sm:$0x3f]  ;;  %s2241_s17 = smov 91   ;;  %s2242_s19 = smov 90  }
  0x40   : > { %v502_v18 = vrot.slane %v1888_v16, %v2378_v6  ;;  %v286_v19 = vrot.slane %v279_v15, %v2378_v6  ;;  %v263_v23 = vrot.slane %v249_v17, %v2378_v6  ;;  %v495_v24 = vrot.slane %v488_v20, %v2378_v6  ;;  %v397_v47 = vld [vmem:[%s2368_s10] sm:$0x3f]  ;;  %v1893_v59 = vld [vmem:[%s2368_s10 + $0x6] sm:$0x3f]  ;;  %v1898_v15 = vld [vmem:[%s2368_s10 + $0xc] sm:$0x3f] }
  0x41   : > { %264 = vrot.lane.b32.xlu1 %v256_v10, %s2235_s22  ;;  %234 = vrot.lane.b32.xlu0 %v231_v11, %s2236_s30  ;;  %v531_v28 = vrot.slane %v517_v25, %v2378_v6  ;;  %v524_v29 = vrot.slane %v1889_v21, %v2378_v6  ;;  %v560_v32 = vrot.slane %v1890_v27, %v2378_v6  ;;  %v1894_v63 = vld [vmem:[%s2368_s10 + $0x6] sm:$0x3f]  ;;  %v427_v3 = vld [vmem:[%s2368_s10] sm:$0x3f]  ;;  %vm245_vm1 = vcmask 257026   ;;  %s1991_s8 = smul.u32 192, %s2364_s5 }
  0x42   : > { %v553_v33 = vrot.slane %v546_v30, %v2378_v6  ;;  %v323_v36 = vrot.slane %v309_v34, %v2378_v6  ;;  %v316_v37 = vrot.slane %v307_v31, %v2378_v6  ;;  %v339_v38 = vcombine.low %v337_v35, %v337_v35  ;;  %v1895_v9 = vld [vmem:[%s2368_s10 + $0x6] sm:$0x3f]  ;;  %v1896_v11 = vld [vmem:[%s2368_s10 + $0xc] sm:$0x3f]  ;;  %p2842_p11 = scmp.ne.s32.totalorder %s2839_s23, 0 }
  0x43   : > { %v353_v42 = vrot.slane %v337_v35, %v2378_v6  ;;  %v209_v43 = vrot.slane %v195_v40, %v2378_v6  ;;  %v369_v45 = vcombine.high %v367_v39, %v367_v39  ;;  %v481_v46 = vrot.slane %v467_v41, %v2378_v6  ;;  %1897 = vst.sshfl [vmem:[#allocation2 + $0x18] sm:$0xf pattern:$0x76325410] %v1896_v11  ;;  %v1899_v20 = vld [vmem:[%s2368_s10 + $0xc] sm:$0x3f] }
  0x44   : > { %v346_v44 = vrot.slane %v339_v38, %v2378_v6  ;;  %v376_v49 = vrot.slane %v367_v39, %v2378_v6  ;;  %v399_v50 = vcombine.low %v397_v47, %v397_v47  ;;  %v413_v52 = vrot.slane %v397_v47, %v2378_v6  ;;  %v1904_v40 = vld [vmem:[%s2368_s10 + $0xc] sm:$0x3f]  ;;  %s2737_s9 = scalar_lea.vmem [#allocation6], %s1991_s8 }
  0x45   : > { %296 = vrot.lane.b32.xlu1 %v293_v13, %s2237_s4  ;;  %232 = vrot.lane.b32.xlu0 %v224_v14, %s2236_s30  ;;  %214 = vst.msk [vmem:[#allocation2 + $0x8] sm:$0x3] %vm213_vm0, %v209_v43  ;;  %485 = vst.msk [vmem:[#allocation2 + $0x14] sm:$0x3] %vm213_vm0, %v481_v46  ;;  %v383_v48 = vrot.slane %v369_v45, %v2378_v6  ;;  %v575_v54 = vcombine.high %v1891_v51, %v1891_v51  ;;  %v1906_v45 = vld [vmem:[%s2368_s10 + $0x12] sm:$0x3f] }
  0x46   : > { %v406_v53 = vrot.slane %v399_v50, %v2378_v6  ;;  %v582_v57 = vrot.slane %v1891_v51, %v2378_v6  ;;  %v604_v58 = vcombine.low %v1892_v55, %v1892_v55  ;;  %v618_v60 = vrot.slane %v1892_v55, %v2378_v6  ;;  %1907 = vst.sshfl [vmem:[#allocation2 + $0x24] sm:$0xf pattern:$0x76325410] %v1906_v45  ;;  %v1908_v50 = vld [vmem:[%s2368_s10 + $0x12] sm:$0x3f] }
  0x47   : > { %v589_v56 = vrot.slane %v575_v54, %v2378_v6  ;;  %v633_v62 = vcombine.high %v1893_v59, %v1893_v59  ;;  %v640_v1 = vrot.slane %v1893_v59, %v2378_v6  ;;  %v662_v2 = vcombine.low %v1894_v63, %v1894_v63  ;;  %v1909_v55 = vld [vmem:[%s2368_s10 + $0x12] sm:$0x3f] }
  0x48   : > { %v611_v61 = vrot.slane %v604_v58, %v2378_v6  ;;  %v676_v5 = vrot.slane %v1894_v63, %v2378_v6  ;;  %v429_v8 = vcombine.high %v427_v3, %v427_v3  ;;  %v436_v10 = vrot.slane %v427_v3, %v2378_v6  ;;  %v1910_v59 = vld [vmem:[%s2368_s10 + $0x12] sm:$0x3f] }
  0x49   : > { %505 = vrot.lane.b32.xlu1 %v502_v18, %s2236_s30  ;;  %294 = vrot.lane.b32.xlu0 %v286_v19, %s2237_s4  ;;  %v647_v0 = vrot.slane %v633_v62, %v2378_v6  ;;  %v669_v7 = vrot.slane %v662_v2, %v2378_v6  ;;  %v691_v13 = vcombine.high %v1895_v9, %v1895_v9  ;;  %v1911_v63 = vld [vmem:[%s2368_s10 + $0x12] sm:$0x3f]  ;;  %vm457_vm2 = vcmask 1043712  }
  0x4a   : > { %v443_v12 = vrot.slane %v429_v8, %v2378_v6  ;;  %v726_v14 = vcombine.high %v1896_v11, %v1896_v11  ;;  %v698_v18 = vrot.slane %v1895_v9, %v2378_v6  ;;  %v747_v19 = vcombine.low %v1898_v15, %v1898_v15  ;;  %v1912_v3 = vld [vmem:[%s2368_s10 + $0x12] sm:$0x3f] }
  0x4b   : > { %v705_v17 = vrot.slane %v691_v13, %v2378_v6  ;;  %v761_v21 = vrot.slane %v1898_v15, %v2378_v6  ;;  %v783_v26 = vrot.slane %v1899_v20, %v2378_v6  ;;  %v921_v43 = vcombine.low %v1904_v40, %v1904_v40  ;;  %v1913_v9 = vld [vmem:[%s2368_s10 + $0x12] sm:$0x3f] }
  0x4c   : > { %v740_v16 = vrot.slane %v726_v14, %v2378_v6  ;;  %v754_v22 = vrot.slane %v747_v19, %v2378_v6  ;;  %v985_v46 = vcombine.high %v1906_v45, %v1906_v45  ;;  %v935_v47 = vrot.slane %v1904_v40, %v2378_v6  ;;  %v1914_v13 = vld [vmem:[%s2368_s10 + $0x12] sm:$0x3f] }
  0x4d   : > { %266 = vrot.lane.b32.xlu1 %v263_v23, %s2235_s22  ;;  %503 = vrot.lane.b32.xlu0 %v495_v24, %s2236_s30  ;;  %v776_v23 = vcombine.high %v1899_v20, %v1899_v20  ;;  %v1900_v24 = vld [vmem:[%s2368_s10 + $0xc] sm:$0x3f]  ;;  %v1006_v54 = vcombine.low %v1908_v50, %v1908_v50  ;;  %v1035_v58 = vcombine.high %v1909_v55, %v1909_v55  ;;  %vm238_vm3 = vcmask 1043456  }
  0x4e   : > { %744 = vst.msk [vmem:[#allocation2 + $0x20] sm:$0x3] %vm213_vm0, %v740_v16  ;;  %v805_v27 = vcombine.low %v1900_v24, %v1900_v24  ;;  %v999_v51 = vrot.slane %v985_v46, %v2378_v6  ;;  %v1064_v62 = vcombine.low %v1910_v59, %v1910_v59  ;;  %v1093_v2 = vcombine.high %v1911_v63, %v1911_v63  ;;  %v1273_v45 = vld [vmem:[%s2835_s2] sm:$0xff] }
  0x4f   : > { %v790_v25 = vrot.slane %v776_v23, %v2378_v6  ;;  %v1122_v8 = vcombine.low %v1912_v3, %v1912_v3  ;;  %v1158_v15 = vrot.slane %v1913_v9, %v2378_v6  ;;  %v1180_v16 = vcombine.low %v1914_v13, %v1914_v13 }
  0x50   : > { %v812_v30 = vrot.slane %v805_v27, %v2378_v6  ;;  %1003 = vst.msk [vmem:[#allocation2 + $0x2c] sm:$0x3] %vm213_vm0, %v999_v51  ;;  %v1194_v20 = vrot.slane %v1914_v13, %v2378_v6  ;;  %vm240_vm4 = vcmask 1039360   ;;  %vm301_vm5 = vcmask 900096  }
  0x51   : > { %534 = vrot.lane.b32.xlu1 %v531_v28, %s2235_s22  ;;  %532 = vrot.lane.b32.xlu0 %v524_v29, %s2235_s22  ;;  %v1901_v28 = vld [vmem:[%s2368_s10 + $0xc] sm:$0x3f]  ;;  %v819_v29 = vrot.slane %v1900_v24, %v2378_v6  ;;  %v1129_v11 = vrot.slane %v1122_v8, %v2378_v6  ;;  %vm271_vm6 = vcmask 1031168   ;;  %vm331_vm7 = vcmask 891904  }
  0x52   : > { %v834_v31 = vcombine.high %v1901_v28, %v1901_v28  ;;  %v841_v34 = vrot.slane %v1901_v28, %v2378_v6  ;;  %vm361_vm8 = vcmask 883712   ;;  %vm391_vm9 = vcmask 752640  }
  0x53   : > { %vm421_vm10 = vcmask 744448   ;;  %vm462_vm11 = vcmask 1041664   ;;  %vm451_vm12 = vcmask 736256   ;;  %vm1444_vm13 = vcmask 1041408  }
  0x54   : > { %vm1440_vm14 = vcmask 293888  }
  0x55   : > { %563 = vrot.lane.b32.xlu1 %v560_v32, %s2237_s4  ;;  %561 = vrot.lane.b32.xlu0 %v553_v33, %s2237_s4  ;;  %v1902_v32 = vld [vmem:[%s2368_s10 + $0xc] sm:$0x3f]  ;;  %v848_v33 = vrot.slane %v834_v31, %v2378_v6 }
  0x56   : > { %v863_v35 = vcombine.low %v1902_v32, %v1902_v32 }
  0x58   : > { %v870_v38 = vrot.slane %v863_v35, %v2378_v6 }
  0x59   : > { %326 = vrot.lane.b32.xlu1 %v323_v36, %s2238_s6  ;;  %324 = vrot.lane.b32.xlu0 %v316_v37, %s2238_s6  ;;  %v1903_v36 = vld [vmem:[%s2368_s10 + $0xc] sm:$0x3f]  ;;  %v877_v37 = vrot.slane %v1902_v32, %v2378_v6 }
  0x5a   : > { %v892_v39 = vcombine.high %v1903_v36, %v1903_v36 }
  0x5c   : > { %v906_v41 = vrot.slane %v892_v39, %v2378_v6 }
  0x5d   : > { %356 = vrot.lane.b32.xlu1 %v353_v42, %s2239_s7  ;;  %354 = vrot.lane.b32.xlu0 %v346_v44, %s2239_s7  ;;  %v899_v42 = vrot.slane %v1903_v36, %v2378_v6  ;;  %v1905_v44 = vld [vmem:[%s2368_s10 + $0xc] sm:$0x3f] }
  0x61   : > { %386 = vrot.lane.b32.xlu1 %v383_v48, %s2240_s11  ;;  %384 = vrot.lane.b32.xlu0 %v376_v49, %s2240_s11  ;;  %v928_v48 = vrot.slane %v921_v43, %v2378_v6  ;;  %v950_v49 = vcombine.high %v1905_v44, %v1905_v44 }
  0x65   : > { %416 = vrot.lane.b32.xlu1 %v413_v52, %s2241_s17  ;;  %414 = vrot.lane.b32.xlu0 %v406_v53, %s2241_s17  ;;  %v964_v52 = vrot.slane %v950_v49, %v2378_v6  ;;  %v957_v53 = vrot.slane %v1905_v44, %v2378_v6  ;;  %v1274_v44 = vld [vmem:[%s2835_s2 + $0x8] sm:$0xff] }
  0x69   : > { %592 = vrot.lane.b32.xlu1 %v589_v56, %s2238_s6  ;;  %590 = vrot.lane.b32.xlu0 %v582_v57, %s2238_s6  ;;  %v1020_v56 = vrot.slane %v1908_v50, %v2378_v6  ;;  %v1013_v57 = vrot.slane %v1006_v54, %v2378_v6 }
  0x6d   : > { %621 = vrot.lane.b32.xlu1 %v618_v60, %s2239_s7  ;;  %619 = vrot.lane.b32.xlu0 %v611_v61, %s2239_s7  ;;  %v1049_v60 = vrot.slane %v1035_v58, %v2378_v6  ;;  %v1042_v61 = vrot.slane %v1909_v55, %v2378_v6 }
  0x71   : > { %650 = vrot.lane.b32.xlu1 %v647_v0, %s2240_s11  ;;  %648 = vrot.lane.b32.xlu0 %v640_v1, %s2240_s11  ;;  %v1078_v0 = vrot.slane %v1910_v59, %v2378_v6  ;;  %v1071_v1 = vrot.slane %v1064_v62, %v2378_v6 }
  0x75   : > { %679 = vrot.lane.b32.xlu1 %v676_v5, %s2241_s17  ;;  %677 = vrot.lane.b32.xlu0 %v669_v7, %s2241_s17  ;;  %v1107_v5 = vrot.slane %v1093_v2, %v2378_v6  ;;  %v1100_v7 = vrot.slane %v1911_v63, %v2378_v6 }
  0x79   : > { %446 = vrot.lane.b32.xlu1 %v443_v12, %s2242_s19  ;;  %444 = vrot.lane.b32.xlu0 %v436_v10, %s2242_s19  ;;  %v1136_v10 = vrot.slane %v1912_v3, %v2378_v6  ;;  %v1151_v12 = vcombine.high %v1913_v9, %v1913_v9 }
  0x7b   : > { %v1165_v14 = vrot.slane %v1151_v12, %v2378_v6 }
  0x7d   : > { %708 = vrot.lane.b32.xlu1 %v705_v17, %s2242_s19  ;;  %706 = vrot.lane.b32.xlu0 %v698_v18, %s2242_s19  ;;  %v1915_v17 = vld [vmem:[%s2368_s10 + $0x12] sm:$0x3f]  ;;  %s1992_s10 = smul.u32 3072, %s2287_s16  ;;  %s1805_s16 = sshll.u32 %s2737_s9, 4  ;;  %s2785_s16 = int_to_ptr.vmem [resolvable:$true] %s1805_s16 }
  0x7e   : > { %v1216_v28 = vrot.slane %v1915_v17, %v2378_v6 }
  0x81   : > { %764 = vrot.lane.b32.xlu1 %v761_v21, %s2236_s30  ;;  %762 = vrot.lane.b32.xlu0 %v754_v22, %s2236_s30  ;;  %v1187_v21 = vrot.slane %v1180_v16, %v2378_v6  ;;  %v1209_v22 = vcombine.high %v1915_v17, %v1915_v17 }
  0x83   : > { %v1223_v27 = vrot.slane %v1209_v22, %v2378_v6 }
  0x85   : > { %793 = vrot.lane.b32.xlu1 %v790_v25, %s2235_s22  ;;  %791 = vrot.lane.b32.xlu0 %v783_v26, %s2235_s22 }
  0x89   : > { %822 = vrot.lane.b32.xlu1 %v819_v29, %s2237_s4  ;;  %820 = vrot.lane.b32.xlu0 %v812_v30, %s2237_s4 }
  0x8d   : > { %851 = vrot.lane.b32.xlu1 %v848_v33, %s2238_s6  ;;  %849 = vrot.lane.b32.xlu0 %v841_v34, %s2238_s6 }
  0x91   : > { %880 = vrot.lane.b32.xlu1 %v877_v37, %s2239_s7  ;;  %878 = vrot.lane.b32.xlu0 %v870_v38, %s2239_s7 }
  0x95   : > { %909 = vrot.lane.b32.xlu1 %v906_v41, %s2240_s11  ;;  %907 = vrot.lane.b32.xlu0 %v899_v42, %s2240_s11 }
  0x99   : > { %938 = vrot.lane.b32.xlu1 %v935_v47, %s2241_s17  ;;  %936 = vrot.lane.b32.xlu0 %v928_v48, %s2241_s17 }
  0x9d   : > { %967 = vrot.lane.b32.xlu1 %v964_v52, %s2242_s19  ;;  %965 = vrot.lane.b32.xlu0 %v957_v53, %s2242_s19 }
  0xa1   : > { %1023 = vrot.lane.b32.xlu1 %v1020_v56, %s2236_s30  ;;  %1021 = vrot.lane.b32.xlu0 %v1013_v57, %s2236_s30 }
  0xa5   : > { %1052 = vrot.lane.b32.xlu1 %v1049_v60, %s2235_s22  ;;  %1050 = vrot.lane.b32.xlu0 %v1042_v61, %s2235_s22 }
  0xa9   : > { %1081 = vrot.lane.b32.xlu1 %v1078_v0, %s2237_s4  ;;  %1079 = vrot.lane.b32.xlu0 %v1071_v1, %s2237_s4  ;;  %s2781_s4 = scalar_lea.hbm %s2836_s3, %s1992_s10 }
  0xad   : > { %1110 = vrot.lane.b32.xlu1 %v1107_v5, %s2238_s6  ;;  %1108 = vrot.lane.b32.xlu0 %v1100_v7, %s2238_s6  ;;  %s1791_s6 = scalar_lea.sflag [#allocation5], %s2364_s5 }
  0xb1   : > { %1139 = vrot.lane.b32.xlu1 %v1136_v10, %s2239_s7  ;;  %1137 = vrot.lane.b32.xlu0 %v1129_v11, %s2239_s7  ;;  %s2162_s7 = scalar_lea.vmem %s2785_s16, 3072 }
  0xb2   : > { %p2163_p6 = scmp.ne.s32.totalorder %s2785_s16, %s2162_s7 }
  0xb3   : > { %v265_v18 = vpop.permute.xlu1 %264  ;;  %v235_v19 = vpop.permute.xlu0 %234 }
  0xb4   : > { %246 = vst.msk [vmem:[#allocation2 + $0x8] sm:$0xc] %vm245_vm1, %v235_v19  ;;  %v237_v25 = vrot.slane %v235_v19, 4  ;;  %v268_v38 = vrot.slane %v265_v18, 4  ;;  %p2164_p12 = pnand %p2163_p6, %p2842_p11 }
  0xb5   : > { %458 = vst.msk [vmem:[#allocation2 + $0x8] sm:$0xf] %vm457_vm2, %v2234_v4  ;;  %1168 = vrot.lane.b32.xlu1 %v1165_v14, %s2240_s11  ;;  %1166 = vrot.lane.b32.xlu0 %v1158_v15, %s2240_s11  ;;  %s2243_s11 = smov [#allocation6]  }
  0xb6   : > { %p2165_p13 = pneg %p2164_p12 }
  0xb7   : > { %v297_v23 = vpop.permute.xlu1 %296  ;;  %v233_v24 = vpop.permute.xlu0 %232 }
  0xb8   : > { %306 = vst.msk [vmem:[#allocation2 + $0x38] sm:$0xc] %vm245_vm1, %v297_v23  ;;  %v236_v26 = vrot.slane %v233_v24, 4  ;;  %v299_v33 = vrot.slane %v297_v23, 4 }
  0xb9   : > { %1197 = vrot.lane.b32.xlu1 %v1194_v20, %s2241_s17  ;;  %1195 = vrot.lane.b32.xlu0 %v1187_v21, %s2241_s17  ;;  %s2166_s17 = sshll.u32 %s2243_s11, 4  ;;  %s2167_s17 = int_to_ptr.vmem [resolvable:$false] %s2166_s17 }
  0xba   : > { %v239_v29 = vsel %vm238_vm3, %v236_v26, %v237_v25  ;;  %p2169_p8 = scmp.lt.s32.totalorder %s2785_s16, %s2167_s17 }
  0xbb   : > { %v241_v30 = vsel %vm240_vm4, %v233_v24, %v239_v29  ;;  %v506_v31 = vpop.permute.xlu1 %505  ;;  %v295_v32 = vpop.permute.xlu0 %294 }
  0xbc   : > { %244 = vst [vmem:[#allocation2] sm:$0xcc] %v241_v30  ;;  %514 = vst.msk [vmem:[#allocation2 + $0x14] sm:$0xc] %vm245_vm1, %v506_v31  ;;  %v298_v34 = vrot.slane %v295_v32, 4  ;;  %v508_v39 = vrot.slane %v506_v31, 4 }
  0xbd   : > { %718 = vst.msk [vmem:[#allocation2 + $0x14] sm:$0xf] %vm457_vm2, %v2234_v4  ;;  %1226 = vrot.lane.b32.xlu1 %v1223_v27, %s2242_s19  ;;  %1224 = vrot.lane.b32.xlu0 %v1216_v28, %s2242_s19  ;;  %s2168_s19 = scalar_lea.vmem %s2167_s17, 6144 }
  0xbe   : > { %v300_v6 = vsel %vm238_vm3, %v298_v34, %v299_v33  ;;  %p2170_p10 = scmp.lt.s32.totalorder %s2168_s19, %s2162_s7 }
  0xbf   : > { %v302_v35 = vsel %vm301_vm5, %v295_v32, %v300_v6  ;;  %v267_v36 = vpop.permute.xlu1 %266  ;;  %v504_v37 = vpop.permute.xlu0 %503 }
  0xc0   : > { %305 = vst [vmem:[#allocation2 + $0x30] sm:$0xcc] %v302_v35  ;;  %v269_v40 = vrot.slane %v267_v36, 4  ;;  %276 = vst.msk [vmem:[#allocation2 + $0x38] sm:$0x3] %vm213_vm0, %v267_v36  ;;  %v507_v41 = vrot.slane %v504_v37, 4  ;;  %p2171_p0 = por %p2170_p10, %p2169_p8 }
  0xc1   : > { %459 = vst.msk [vmem:[#allocation2 + $0x38] sm:$0xf] %vm457_vm2, %v2234_v4  ;;  %1282 = vperm.xlu1 %2054, %v1274_v44   ;;  %1277 = vperm.xlu0 %2053, %v1273_v45  }
  0xc2   : > { %v270_v42 = vsel %vm238_vm3, %v268_v38, %v269_v40  ;;  %v509_v43 = vsel %vm238_vm3, %v507_v41, %v508_v39  ;;  %p2172_p2 = pnand %p2171_p0, %p2165_p13 }
  0xc3   : > { %v510_v46 = vsel %vm240_vm4, %v504_v37, %v509_v43  ;;  %v535_v47 = vpop.permute.xlu1 %534  ;;  %v272_v48 = vsel %vm271_vm6, %v265_v18, %v270_v42  ;;  %v533_v49 = vpop.permute.xlu0 %532  ;;  %v1243_v62 = vld [vmem:[#allocation2] sm:$0xff] }
  0xc4   : > { %513 = vst [vmem:[#allocation2 + $0xc] sm:$0xcc] %v510_v46  ;;  %v537_v50 = vrot.slane %v535_v47, 4  ;;  %543 = vst.msk [vmem:[#allocation2 + $0x44] sm:$0x3] %vm213_vm0, %v535_v47  ;;  %v536_v51 = vrot.slane %v533_v49, 4 }
  0xc5   : > { %275 = vst [vmem:[#allocation2 + $0x30] sm:$0x33] %v272_v48 }
  0xc6   : > { %v538_v52 = vsel %vm238_vm3, %v536_v51, %v537_v50 }
  0xc7   : > { %v539_v53 = vsel %vm271_vm6, %v533_v49, %v538_v52  ;;  %v564_v54 = vpop.permute.xlu1 %563  ;;  %v562_v55 = vpop.permute.xlu0 %561 }
  0xc8   : > { %542 = vst [vmem:[#allocation2 + $0x3c] sm:$0x33] %v539_v53  ;;  %v566_v56 = vrot.slane %v564_v54, 4  ;;  %572 = vst.msk [vmem:[#allocation2 + $0x44] sm:$0xc] %vm245_vm1, %v564_v54  ;;  %v565_v57 = vrot.slane %v562_v55, 4 }
  0xc9   : > { %719 = vst.msk [vmem:[#allocation2 + $0x44] sm:$0xf] %vm457_vm2, %v2234_v4 }
  0xca   : > { %v567_v58 = vsel %vm238_vm3, %v565_v57, %v566_v56 }
  0xcb   : > { %v568_v59 = vsel %vm301_vm5, %v562_v55, %v567_v58  ;;  %v327_v60 = vpop.permute.xlu1 %326  ;;  %v325_v61 = vpop.permute.xlu0 %324  ;;  %v1244_v13 = vld [vmem:[#allocation2 + $0x8] sm:$0xff] }
  0xcc   : > { %v1249_v63 = vld [vmem:[#allocation2 + $0x30] sm:$0xff]  ;;  %571 = vst [vmem:[#allocation2 + $0x3c] sm:$0xcc] %v568_v59  ;;  %v329_v1 = vrot.slane %v327_v60, 4  ;;  %336 = vst.msk [vmem:[#allocation2 + $0x68] sm:$0x3] %vm213_vm0, %v327_v60 }
  0xcd   : > { %v2089_v0 = vld [vmem:[#allocation2 + $0x4] ss:$48 sps:$4 sm:$0xff]   ;;  %v328_v2 = vrot.slane %v325_v61, 4  ;;  %v1917_v3 = vcombine.low %v1243_v62, %v1249_v63 }
  0xce   : > { %1481 = vmatprep.subr.bf16.mxu0 %v2089_v0 }
  0xcf   : > { %v330_v5 = vsel %vm238_vm3, %v328_v2, %v329_v1  ;;  %1482 = vmatpush1.bf16.msra.mxu0 %v1917_v3  ;;  %v357_v8 = vpop.permute.xlu1 %356  ;;  %v355_v9 = vpop.permute.xlu0 %354 }
  0xd0   : > { %v332_v7 = vsel %vm331_vm7, %v325_v61, %v330_v5  ;;  %v359_v10 = vrot.slane %v357_v8, 4  ;;  %366 = vst.msk [vmem:[#allocation2 + $0x68] sm:$0xc] %vm245_vm1, %v357_v8  ;;  %v358_v11 = vrot.slane %v355_v9, 4 }
  0xd1   : > { %335 = vst [vmem:[#allocation2 + $0x60] sm:$0x33] %v332_v7  ;;  %460 = vst.msk [vmem:[#allocation2 + $0x68] sm:$0xf] %vm457_vm2, %v2234_v4 }
  0xd2   : > { %v360_v12 = vsel %vm238_vm3, %v358_v11, %v359_v10 }
  0xd3   : > { %v362_v14 = vsel %vm361_vm8, %v355_v9, %v360_v12  ;;  %v387_v15 = vpop.permute.xlu1 %386  ;;  %v385_v16 = vpop.permute.xlu0 %384  ;;  %v1250_v17 = vld [vmem:[#allocation2 + $0x38] sm:$0xff] }
  0xd4   : > { %v2091_v18 = vld [vmem:[#allocation2 + $0xc] ss:$48 sps:$4 sm:$0xff]   ;;  %365 = vst [vmem:[#allocation2 + $0x60] sm:$0xcc] %v362_v14  ;;  %v389_v19 = vrot.slane %v387_v15, 4  ;;  %v388_v20 = vrot.slane %v385_v16, 4  ;;  %v1919_v21 = vcombine.low %v1244_v13, %v1250_v17 }
  0xd5   : > { %396 = vst.msk [vmem:[#allocation2 + $0x98] sm:$0x3] %vm213_vm0, %v387_v15  ;;  %1524 = vmatprep.subr.bf16.mxu1 %v2091_v18 }
  0xd6   : > { %v390_v22 = vsel %vm238_vm3, %v388_v20, %v389_v19  ;;  %1525 = vmatpush1.bf16.msra.mxu1 %v1919_v21 }
  0xd7   : > { %v392_v23 = vsel %vm391_vm9, %v385_v16, %v390_v22  ;;  %v417_v24 = vpop.permute.xlu1 %416  ;;  %v415_v25 = vpop.permute.xlu0 %414 }
  0xd8   : > { %395 = vst [vmem:[#allocation2 + $0x90] sm:$0x33] %v392_v23  ;;  %v419_v26 = vrot.slane %v417_v24, 4  ;;  %426 = vst.msk [vmem:[#allocation2 + $0x98] sm:$0xc] %vm245_vm1, %v417_v24  ;;  %v418_v27 = vrot.slane %v415_v25, 4 }
  0xd9   : > { %461 = vst.msk [vmem:[#allocation2 + $0x98] sm:$0xf] %vm457_vm2, %v2234_v4 }
  0xda   : > { %v420_v28 = vsel %vm238_vm3, %v418_v27, %v419_v26  ;;  %v2101_v26 = vld [vmem:[#allocation2 + $0x14] ss:$48 sps:$4 sm:$0xff]  }
  0xdb   : > { %v422_v29 = vsel %vm421_vm10, %v415_v25, %v420_v28  ;;  %v593_v30 = vpop.permute.xlu1 %592  ;;  %v591_v31 = vpop.permute.xlu0 %590  ;;  %v1255_v43 = vld [vmem:[#allocation2 + $0x60] sm:$0xff] }
  0xdc   : > { %425 = vst [vmem:[#allocation2 + $0x90] sm:$0xcc] %v422_v29  ;;  %v595_v32 = vrot.slane %v593_v30, 4  ;;  %601 = vst.msk [vmem:[#allocation2 + $0x74] sm:$0x3] %vm213_vm0, %v593_v30  ;;  %v594_v33 = vrot.slane %v591_v31, 4 }
  0xdd   : > { %v2638_v27 = vld [vmem:[%s2834_s1] sm:$0xff]  }
  0xde   : > { %v596_v34 = vsel %vm238_vm3, %v594_v33, %v595_v32 }
  0xdf   : > { %v597_v6 = vsel %vm331_vm7, %v591_v31, %v596_v34  ;;  %v622_v35 = vpop.permute.xlu1 %621  ;;  %v620_v36 = vpop.permute.xlu0 %619 }
  0xe0   : > { %600 = vst [vmem:[#allocation2 + $0x6c] sm:$0x33] %v597_v6  ;;  %v624_v37 = vrot.slane %v622_v35, 4  ;;  %630 = vst.msk [vmem:[#allocation2 + $0x74] sm:$0xc] %vm245_vm1, %v622_v35  ;;  %v623_v38 = vrot.slane %v620_v36, 4 }
  0xe1   : > { %720 = vst.msk [vmem:[#allocation2 + $0x74] sm:$0xf] %vm457_vm2, %v2234_v4  ;;  %v2099_v35 = vld [vmem:[#allocation2 + $0x10] ss:$48 sps:$4 sm:$0xff]  }
  0xe2   : > { %v625_v39 = vsel %vm238_vm3, %v623_v38, %v624_v37 }
  0xe3   : > { %v626_v40 = vsel %vm361_vm8, %v620_v36, %v625_v39  ;;  %v651_v41 = vpop.permute.xlu1 %650  ;;  %v649_v42 = vpop.permute.xlu0 %648  ;;  %v1261_v44 = vld [vmem:[#allocation2 + $0x90] sm:$0xff] }
  0xe4   : > { %v2093_v45 = vld [vmem:[#allocation2 + $0x64] ss:$48 sps:$4 sm:$0xff]   ;;  %629 = vst [vmem:[#allocation2 + $0x6c] sm:$0xcc] %v626_v40  ;;  %v653_v46 = vrot.slane %v651_v41, 4  ;;  %v652_v47 = vrot.slane %v649_v42, 4  ;;  %v1929_v48 = vcombine.low %v1255_v43, %v1261_v44 }
  0xe5   : > { %659 = vst.msk [vmem:[#allocation2 + $0xa4] sm:$0x3] %vm213_vm0, %v651_v41  ;;  %1483 = vmatprep.subr.bf16.mxu0 %v2093_v45 }
  0xe6   : > { %v654_v49 = vsel %vm238_vm3, %v652_v47, %v653_v46  ;;  %1484 = vmatpush1.bf16.msra.mxu0 %v1929_v48 }
  0xe7   : > { %v655_v50 = vsel %vm391_vm9, %v649_v42, %v654_v49  ;;  %v680_v51 = vpop.permute.xlu1 %679  ;;  %v678_v52 = vpop.permute.xlu0 %677 }
  0xe8   : > { %658 = vst [vmem:[#allocation2 + $0x9c] sm:$0x33] %v655_v50  ;;  %v682_v53 = vrot.slane %v680_v51, 4  ;;  %688 = vst.msk [vmem:[#allocation2 + $0xa4] sm:$0xc] %vm245_vm1, %v680_v51  ;;  %v681_v54 = vrot.slane %v678_v52, 4 }
  0xe9   : > { %721 = vst.msk [vmem:[#allocation2 + $0xa4] sm:$0xf] %vm457_vm2, %v2234_v4 }
  0xea   : > { %v683_v55 = vsel %vm238_vm3, %v681_v54, %v682_v53 }
  0xeb   : > { %v684_v56 = vsel %vm421_vm10, %v678_v52, %v683_v55  ;;  %v447_v57 = vpop.permute.xlu1 %446  ;;  %v445_v58 = vpop.permute.xlu0 %444  ;;  %v1256_v5 = vld [vmem:[#allocation2 + $0x68] sm:$0xff] }
  0xec   : > { %687 = vst [vmem:[#allocation2 + $0x9c] sm:$0xcc] %v684_v56  ;;  %v449_v59 = vrot.slane %v447_v57, 4  ;;  %456 = vst.msk [vmem:[#allocation2 + $0xc8] sm:$0x3] %vm213_vm0, %v447_v57  ;;  %v448_v60 = vrot.slane %v445_v58, 4 }
  0xed   : > { %463 = vst.msk [vmem:[#allocation2 + $0xc8] sm:$0x3] %vm462_vm11, %v2234_v4 }
  0xee   : > { %v450_v61 = vsel %vm238_vm3, %v448_v60, %v449_v59 }
  0xef   : > { %v452_v62 = vsel %vm451_vm12, %v445_v58, %v450_v61  ;;  %v709_v63 = vpop.permute.xlu1 %708  ;;  %v707_v0 = vpop.permute.xlu0 %706 }
  0xf0   : > { %455 = vst [vmem:[#allocation2 + $0xc0] sm:$0x33] %v452_v62  ;;  %v711_v1 = vrot.slane %v709_v63, 4  ;;  %717 = vst.msk [vmem:[#allocation2 + $0xd4] sm:$0x3] %vm213_vm0, %v709_v63  ;;  %v710_v2 = vrot.slane %v707_v0, 4 }
  0xf1   : > { %722 = vst.msk [vmem:[#allocation2 + $0xd4] sm:$0x3] %vm462_vm11, %v2234_v4  ;;  %v2106_v38 = vld [vmem:[#allocation2 + $0x74] ss:$48 sps:$4 sm:$0xff]  }
  0xf2   : > { %v712_v3 = vsel %vm238_vm3, %v710_v2, %v711_v1 }
  0xf3   : > { %v713_v7 = vsel %vm451_vm12, %v707_v0, %v712_v3  ;;  %v765_v8 = vpop.permute.xlu1 %764  ;;  %v763_v9 = vpop.permute.xlu0 %762  ;;  %v1262_v10 = vld [vmem:[#allocation2 + $0x98] sm:$0xff]  ;;  %v2104_v45 = vld [vmem:[#allocation2 + $0x70] ss:$48 sps:$4 sm:$0xff]  }
  0xf4   : > { %v2096_v11 = vld [vmem:[#allocation2 + $0x6c] ss:$48 sps:$4 sm:$0xff]   ;;  %716 = vst [vmem:[#allocation2 + $0xcc] sm:$0x33] %v713_v7  ;;  %v767_v12 = vrot.slane %v765_v8, 4  ;;  %v766_v13 = vrot.slane %v763_v9, 4  ;;  %v1931_v14 = vcombine.low %v1256_v5, %v1262_v10 }
  0xf5   : > { %773 = vst.msk [vmem:[#allocation2 + $0x20] sm:$0xc] %vm245_vm1, %v765_v8  ;;  %1526 = vmatprep.subr.bf16.mxu1 %v2096_v11 }
  0xf6   : > { %977 = vst.msk [vmem:[#allocation2 + $0x20] sm:$0xf] %vm457_vm2, %v2234_v4  ;;  %v768_v15 = vsel %vm238_vm3, %v766_v13, %v767_v12  ;;  %1527 = vmatpush1.bf16.msra.mxu1 %v1931_v14 }
  0xf7   : > { %v769_v16 = vsel %vm240_vm4, %v763_v9, %v768_v15  ;;  %v794_v17 = vpop.permute.xlu1 %793  ;;  %v792_v18 = vpop.permute.xlu0 %791  ;;  %v1267_v19 = vld [vmem:[#allocation2 + $0xc0] sm:$0x33] }
  0xf8   : > { %772 = vst [vmem:[#allocation2 + $0x18] sm:$0xcc] %v769_v16  ;;  %v796_v20 = vrot.slane %v794_v17, 4  ;;  %802 = vst.msk [vmem:[#allocation2 + $0x50] sm:$0x3] %vm213_vm0, %v794_v17  ;;  %v795_v21 = vrot.slane %v792_v18, 4  ;;  %v1942_v22 = vcombine.high %v1267_v19, %v1267_v19  ;;  %v1941_v23 = vcombine.low %v1267_v19, %v1267_v19 }
  0xfa   : > { %v797_v24 = vsel %vm238_vm3, %v795_v21, %v796_v20  ;;  %1953 = vmatprep.subr.msk.bf16.mxu0 %vm1444_vm13, %v1942_v22  ;;  %v1446_v25 = vsel %vm1444_vm13, %v1941_v23, 0 }
  0xfb   : > { %v798_v28 = vsel %vm271_vm6, %v792_v18, %v797_v24  ;;  %v823_v29 = vpop.permute.xlu1 %822  ;;  %v821_v30 = vpop.permute.xlu0 %820  ;;  %1486 = vmatpush1.bf16.msra.mxu0 %v1446_v25  ;;  %v1268_v31 = vld [vmem:[#allocation2 + $0xc8] sm:$0x33]  ;;  %v1269_v42 = vld [vmem:[#allocation2 + $0xd0] sm:$0x33] }
  0xfc   : > { %801 = vst [vmem:[#allocation2 + $0x48] sm:$0x33] %v798_v28  ;;  %v825_v32 = vrot.slane %v823_v29, 4  ;;  %831 = vst.msk [vmem:[#allocation2 + $0x50] sm:$0xc] %vm245_vm1, %v823_v29  ;;  %v824_v33 = vrot.slane %v821_v30, 4  ;;  %1567 = vmatprep.subr.bf16.mxu0 %v2101_v26  ;;  %v1944_v34 = vcombine.high %v1268_v31, %v1268_v31  ;;  %v1943_v6 = vcombine.low %v1268_v31, %v1268_v31 }
  0xfd   : > { %978 = vst.msk [vmem:[#allocation2 + $0x50] sm:$0xf] %vm457_vm2, %v2234_v4  ;;  %v1946_v47 = vcombine.high %v1269_v42, %v1269_v42  ;;  %v1945_v48 = vcombine.low %v1269_v42, %v1269_v42 }
  0xfe   : > { %v826_v36 = vsel %vm238_vm3, %v824_v33, %v825_v32  ;;  %1955 = vmatprep.subr.msk.bf16.mxu1 %vm1444_vm13, %v1944_v34  ;;  %1954 = vmatmul.mubr.msk.bf16.vlgmr.msra.gmra.mrb[0].mxu0 %vm1440_vm14, %v2638_v27  ;;  %v1452_v37 = vsel %vm1444_vm13, %v1943_v6, 0 }
  0xff   : > { %v827_v39 = vsel %vm301_vm5, %v821_v30, %v826_v36  ;;  %v852_v40 = vpop.permute.xlu1 %851  ;;  %v850_v41 = vpop.permute.xlu0 %849  ;;  %1529 = vmatpush1.bf16.msra.mxu1 %v1452_v37  ;;  %1568 = vmatpush1.bf16.msra.mxu0 %v2099_v35  ;;  %v1458_v55 = vsel %vm1444_vm13, %v1945_v48, 0 }
 0x100   : > { %830 = vst [vmem:[#allocation2 + $0x48] sm:$0xcc] %v827_v39  ;;  %v854_v43 = vrot.slane %v852_v40, 4  ;;  %860 = vst.msk [vmem:[#allocation2 + $0x80] sm:$0x3] %vm213_vm0, %v852_v40  ;;  %v853_v44 = vrot.slane %v850_v41, 4  ;;  %1569 = vmatprep.subr.bf16.mxu0 %v2106_v38  ;;  %1599 = vmatprep.mubr.bf16.mxu0 %v2234_v4 }
 0x102   : > { %v855_v46 = vsel %vm238_vm3, %v853_v44, %v854_v43  ;;  %1956 = vmatmul.mubr.msk.bf16.vlgmr.msra.gmra.mrb[0].mxu1 %vm1440_vm14, %v2638_v27 }
 0x103   : > { %v856_v49 = vsel %vm331_vm7, %v850_v41, %v855_v46  ;;  %v881_v50 = vpop.permute.xlu1 %880  ;;  %v879_v51 = vpop.permute.xlu0 %878  ;;  %1570 = vmatpush1.bf16.msra.mxu0 %v2104_v45  ;;  %1642 = vmatprep.mubr.bf16.mxu1 %v2234_v4 }
 0x104   : > { %859 = vst [vmem:[#allocation2 + $0x78] sm:$0x33] %v856_v49  ;;  %v883_v52 = vrot.slane %v881_v50, 4  ;;  %889 = vst.msk [vmem:[#allocation2 + $0x80] sm:$0xc] %vm245_vm1, %v881_v50  ;;  %v882_v53 = vrot.slane %v879_v51, 4  ;;  %1957 = vmatprep.subr.msk.bf16.mxu0 %vm1444_vm13, %v1946_v47 }
 0x105   : > { %979 = vst.msk [vmem:[#allocation2 + $0x80] sm:$0xf] %vm457_vm2, %v2234_v4 }
 0x106   : > { %v884_v54 = vsel %vm238_vm3, %v882_v53, %v883_v52  ;;  %v2116_v53 = vld [vmem:[#allocation2 + $0x20] ss:$48 sps:$4 sm:$0xff]  }
 0x107   : > { %v885_v56 = vsel %vm361_vm8, %v879_v51, %v884_v54  ;;  %v910_v57 = vpop.permute.xlu1 %909  ;;  %v908_v58 = vpop.permute.xlu0 %907  ;;  %1572 = vmatpush1.bf16.msra.mxu0 %v1458_v55  ;;  %v2108_v59 = vld [vmem:[#allocation2 + $0x18] ss:$48 sps:$4 sm:$0xff]   ;;  %v2110_v60 = vld [vmem:[#allocation2 + $0x1c] ss:$48 sps:$4 sm:$0xff]  }
 0x108   : > { %888 = vst [vmem:[#allocation2 + $0x78] sm:$0xcc] %v885_v56  ;;  %v912_v61 = vrot.slane %v910_v57, 4  ;;  %918 = vst.msk [vmem:[#allocation2 + $0xb0] sm:$0x3] %vm213_vm0, %v910_v57  ;;  %v911_v62 = vrot.slane %v908_v58, 4  ;;  %1610 = vmatprep.subr.bf16.mxu1 %v2110_v60 }
 0x109   : > { %1611 = vmatpush1.bf16.msra.mxu1 %v2108_v59 }
 0x10a   : > { %v913_v63 = vsel %vm238_vm3, %v911_v62, %v912_v61  ;;  %1958 = vmatmul.mubr.msk.bf16.vlgmr.msra.gmra.mrb[4].mxu0 %vm1440_vm14, %v2638_v27 }
 0x10b   : > { %v914_v0 = vsel %vm391_vm9, %v908_v58, %v913_v63  ;;  %v939_v1 = vpop.permute.xlu1 %938  ;;  %v937_v2 = vpop.permute.xlu0 %936  ;;  %1685 = vmatprep.mubr.bf16.mxu0 %v2234_v4 }
 0x10c   : > { %917 = vst [vmem:[#allocation2 + $0xa8] sm:$0x33] %v914_v0  ;;  %v941_v3 = vrot.slane %v939_v1, 4  ;;  %947 = vst.msk [vmem:[#allocation2 + $0xb0] sm:$0xc] %vm245_vm1, %v939_v1  ;;  %v940_v5 = vrot.slane %v937_v2, 4 }
 0x10d   : > { %980 = vst.msk [vmem:[#allocation2 + $0xb0] sm:$0xf] %vm457_vm2, %v2234_v4 }
 0x10e   : > { %v942_v7 = vsel %vm238_vm3, %v940_v5, %v941_v3 }
 0x10f   : > { %v943_v8 = vsel %vm421_vm10, %v937_v2, %v942_v7  ;;  %v968_v9 = vpop.permute.xlu1 %967  ;;  %v966_v10 = vpop.permute.xlu0 %965 }
 0x110   : > { %946 = vst [vmem:[#allocation2 + $0xa8] sm:$0xcc] %v943_v8  ;;  %v970_v11 = vrot.slane %v968_v9, 4  ;;  %976 = vst.msk [vmem:[#allocation2 + $0xe0] sm:$0x3] %vm213_vm0, %v968_v9  ;;  %v969_v12 = vrot.slane %v966_v10, 4 }
 0x111   : > { %981 = vst.msk [vmem:[#allocation2 + $0xe0] sm:$0x3] %vm462_vm11, %v2234_v4 }
 0x112   : > { %v971_v13 = vsel %vm238_vm3, %v969_v12, %v970_v11 }
 0x113   : > { %v972_v14 = vsel %vm451_vm12, %v966_v10, %v971_v13  ;;  %v1024_v15 = vpop.permute.xlu1 %1023  ;;  %v1022_v16 = vpop.permute.xlu0 %1021 }
 0x114   : > { %975 = vst [vmem:[#allocation2 + $0xd8] sm:$0x33] %v972_v14  ;;  %v1026_v17 = vrot.slane %v1024_v15, 4  ;;  %1032 = vst.msk [vmem:[#allocation2 + $0x2c] sm:$0xc] %vm245_vm1, %v1024_v15  ;;  %v1025_v18 = vrot.slane %v1022_v16, 4 }
 0x115   : > { %1236 = vst.msk [vmem:[#allocation2 + $0x2c] sm:$0xf] %vm457_vm2, %v2234_v4  ;;  %v2122_v11 = vld [vmem:[#allocation2 + $0x80] ss:$48 sps:$4 sm:$0xff]  }
 0x116   : > { %v1027_v19 = vsel %vm238_vm3, %v1025_v18, %v1026_v17 }
 0x117   : > { %v1028_v20 = vsel %vm240_vm4, %v1022_v16, %v1027_v19  ;;  %v1053_v21 = vpop.permute.xlu1 %1052  ;;  %v1051_v22 = vpop.permute.xlu0 %1050  ;;  %v2112_v23 = vld [vmem:[#allocation2 + $0x78] ss:$48 sps:$4 sm:$0xff]   ;;  %v2114_v24 = vld [vmem:[#allocation2 + $0x7c] ss:$48 sps:$4 sm:$0xff]  }
 0x118   : > { %1031 = vst [vmem:[#allocation2 + $0x24] sm:$0xcc] %v1028_v20  ;;  %v1055_v25 = vrot.slane %v1053_v21, 4  ;;  %1061 = vst.msk [vmem:[#allocation2 + $0x5c] sm:$0x3] %vm213_vm0, %v1053_v21  ;;  %v1054_v26 = vrot.slane %v1051_v22, 4  ;;  %1612 = vmatprep.subr.bf16.mxu1 %v2114_v24 }
 0x119   : > { %1613 = vmatpush1.bf16.msra.mxu1 %v2112_v23 }
 0x11a   : > { %v1056_v28 = vsel %vm238_vm3, %v1054_v26, %v1055_v25 }
 0x11b   : > { %v1057_v29 = vsel %vm271_vm6, %v1051_v22, %v1056_v28  ;;  %v1082_v30 = vpop.permute.xlu1 %1081  ;;  %v1080_v31 = vpop.permute.xlu0 %1079  ;;  %v1270_v32 = vld [vmem:[#allocation2 + $0xd8] sm:$0x33] }
 0x11c   : > { %1060 = vst [vmem:[#allocation2 + $0x54] sm:$0x33] %v1057_v29  ;;  %v1084_v33 = vrot.slane %v1082_v30, 4  ;;  %1090 = vst.msk [vmem:[#allocation2 + $0x5c] sm:$0xc] %vm245_vm1, %v1082_v30  ;;  %v1083_v34 = vrot.slane %v1080_v31, 4  ;;  %v1948_v6 = vcombine.high %v1270_v32, %v1270_v32  ;;  %v1947_v35 = vcombine.low %v1270_v32, %v1270_v32 }
 0x11d   : > { %1237 = vst.msk [vmem:[#allocation2 + $0x5c] sm:$0xf] %vm457_vm2, %v2234_v4 }
 0x11e   : > { %v1085_v36 = vsel %vm238_vm3, %v1083_v34, %v1084_v33  ;;  %1959 = vmatprep.subr.msk.bf16.mxu1 %vm1444_vm13, %v1948_v6  ;;  %v1464_v37 = vsel %vm1444_vm13, %v1947_v35, 0 }
 0x11f   : > { %v1086_v38 = vsel %vm301_vm5, %v1080_v31, %v1085_v36  ;;  %v1111_v39 = vpop.permute.xlu1 %1110  ;;  %v1109_v40 = vpop.permute.xlu0 %1108  ;;  %1615 = vmatpush1.bf16.msra.mxu1 %v1464_v37 }
 0x120   : > { %1089 = vst [vmem:[#allocation2 + $0x54] sm:$0xcc] %v1086_v38  ;;  %v1113_v41 = vrot.slane %v1111_v39, 4  ;;  %1119 = vst.msk [vmem:[#allocation2 + $0x8c] sm:$0x3] %vm213_vm0, %v1111_v39  ;;  %v1112_v42 = vrot.slane %v1109_v40, 4 }
 0x122   : > { %v1114_v43 = vsel %vm238_vm3, %v1112_v42, %v1113_v41  ;;  %1960 = vmatmul.mubr.msk.bf16.vlgmr.msra.gmra.mrb[4].mxu1 %vm1440_vm14, %v2638_v27 }
 0x123   : > { %v1115_v44 = vsel %vm331_vm7, %v1109_v40, %v1114_v43  ;;  %v1140_v45 = vpop.permute.xlu1 %1139  ;;  %v1138_v46 = vpop.permute.xlu0 %1137  ;;  %1728 = vmatprep.mubr.bf16.mxu1 %v2234_v4 }
 0x124   : > { %1118 = vst [vmem:[#allocation2 + $0x84] sm:$0x33] %v1115_v44  ;;  %v1142_v47 = vrot.slane %v1140_v45, 4  ;;  %1148 = vst.msk [vmem:[#allocation2 + $0x8c] sm:$0xc] %vm245_vm1, %v1140_v45  ;;  %v1141_v48 = vrot.slane %v1138_v46, 4 }
 0x125   : > { %1238 = vst.msk [vmem:[#allocation2 + $0x8c] sm:$0xf] %vm457_vm2, %v2234_v4  ;;  %v2121_v58 = vld [vmem:[#allocation2 + $0x2c] ss:$48 sps:$4 sm:$0xff]  }
 0x126   : > { %v1143_v49 = vsel %vm238_vm3, %v1141_v48, %v1142_v47  ;;  %1696 = vmatprep.subr.bf16.mxu1 %v2121_v58 }
 0x127   : > { %v1144_v50 = vsel %vm361_vm8, %v1138_v46, %v1143_v49  ;;  %v1169_v51 = vpop.permute.xlu1 %1168  ;;  %v1167_v52 = vpop.permute.xlu0 %1166  ;;  %v2118_v54 = vld [vmem:[#allocation2 + $0x24] ss:$48 sps:$4 sm:$0xff]   ;;  %v2119_v57 = vld [vmem:[#allocation2 + $0x28] ss:$48 sps:$4 sm:$0xff]  }
 0x128   : > { %1147 = vst [vmem:[#allocation2 + $0x84] sm:$0xcc] %v1144_v50  ;;  %v1171_v55 = vrot.slane %v1169_v51, 4  ;;  %1177 = vst.msk [vmem:[#allocation2 + $0xbc] sm:$0x3] %vm213_vm0, %v1169_v51  ;;  %v1170_v56 = vrot.slane %v1167_v52, 4  ;;  %1653 = vmatprep.subr.bf16.mxu0 %v2118_v54  ;;  %1697 = vmatpush1.bf16.msra.mxu1 %v2119_v57 }
 0x129   : > { %1654 = vmatpush1.bf16.msra.mxu0 %v2116_v53 }
 0x12a   : > { %v1172_v59 = vsel %vm238_vm3, %v1170_v56, %v1171_v55 }
 0x12b   : > { %v1173_v60 = vsel %vm391_vm9, %v1167_v52, %v1172_v59  ;;  %v1198_v61 = vpop.permute.xlu1 %1197  ;;  %v1196_v62 = vpop.permute.xlu0 %1195 }
 0x12c   : > { %1176 = vst [vmem:[#allocation2 + $0xb4] sm:$0x33] %v1173_v60  ;;  %v1200_v63 = vrot.slane %v1198_v61, 4  ;;  %1206 = vst.msk [vmem:[#allocation2 + $0xbc] sm:$0xc] %vm245_vm1, %v1198_v61  ;;  %v1199_v0 = vrot.slane %v1196_v62, 4 }
 0x12d   : > { %1239 = vst.msk [vmem:[#allocation2 + $0xbc] sm:$0xf] %vm457_vm2, %v2234_v4 }
 0x12e   : > { %v1201_v1 = vsel %vm238_vm3, %v1199_v0, %v1200_v63 }
 0x12f   : > { %v1202_v2 = vsel %vm421_vm10, %v1196_v62, %v1201_v1  ;;  %v1227_v3 = vpop.permute.xlu1 %1226  ;;  %v1225_v5 = vpop.permute.xlu0 %1224 }
 0x130   : > { %1205 = vst [vmem:[#allocation2 + $0xb4] sm:$0xcc] %v1202_v2  ;;  %v1229_v7 = vrot.slane %v1227_v3, 4  ;;  %1235 = vst.msk [vmem:[#allocation2 + $0xec] sm:$0x3] %vm213_vm0, %v1227_v3  ;;  %v1228_v8 = vrot.slane %v1225_v5, 4 }
 0x131   : > { %1240 = vst.msk [vmem:[#allocation2 + $0xec] sm:$0x3] %vm462_vm11, %v2234_v4 }
 0x132   : > { %v1230_v9 = vsel %vm238_vm3, %v1228_v8, %v1229_v7 }
 0x133   : > { %v1231_v10 = vsel %vm451_vm12, %v1225_v5, %v1230_v9 }
 0x134   : > { %1234 = vst [vmem:[#allocation2 + $0xe4] sm:$0x33] %v1231_v10  ;;  %v2127_v14 = vld [vmem:[#allocation2 + $0x8c] ss:$48 sps:$4 sm:$0xff]  }
 0x135   : > { %1698 = vmatprep.subr.bf16.mxu1 %v2127_v14 }
 0x137   : > { %v2124_v12 = vld [vmem:[#allocation2 + $0x84] ss:$48 sps:$4 sm:$0xff]   ;;  %v2125_v13 = vld [vmem:[#allocation2 + $0x88] ss:$48 sps:$4 sm:$0xff]  }
 0x138   : > { %1655 = vmatprep.subr.bf16.mxu0 %v2124_v12  ;;  %1699 = vmatpush1.bf16.msra.mxu1 %v2125_v13 }
 0x139   : > { %1656 = vmatpush1.bf16.msra.mxu0 %v2122_v11 }
 0x13b   : > { %v1271_v15 = vld [vmem:[#allocation2 + $0xe0] sm:$0x33]  ;;  %v1272_v16 = vld [vmem:[#allocation2 + $0xe8] sm:$0x33] }
 0x13c   : > { %v1950_v17 = vcombine.high %v1271_v15, %v1271_v15  ;;  %v1952_v18 = vcombine.high %v1272_v16, %v1272_v16  ;;  %v1949_v19 = vcombine.low %v1271_v15, %v1271_v15  ;;  %v1951_v4 = vcombine.low %v1272_v16, %v1272_v16 }
 0x13e   : > { %1961 = vmatprep.subr.msk.bf16.mxu0 %vm1444_vm13, %v1950_v17  ;;  %1963 = vmatprep.subr.msk.bf16.mxu1 %vm1444_vm13, %v1952_v18  ;;  %v1470_v20 = vsel %vm1444_vm13, %v1949_v19, 0  ;;  %v1476_v21 = vsel %vm1444_vm13, %v1951_v4, 0 }
 0x13f   : > { %1658 = vmatpush1.bf16.msra.mxu0 %v1470_v20  ;;  %1701 = vmatpush1.bf16.msra.mxu1 %v1476_v21 }
 0x140   : > { %v2728_v22 = vpop.permute.xlu0 %1277  ;;  %v2730_v24 = vpop.permute.xlu1 %1282 }
 0x142   : > { %1962 = vmatmul.mubr.msk.bf16.vlgmr.msra.gmra.mrb[8].mxu0 %vm1440_vm14, %v2638_v27  ;;  %1964 = vmatmul.mubr.msk.bf16.vlgmr.msra.gmra.mrb[8].mxu1 %vm1440_vm14, %v2638_v27 }
 0x1d1   : > { %v1515_v23 = vpop.f32.mrb[0].mxu0 }
 0x1d2   : > { %v1517_v25 = vpop.f32.mrb[1].mxu0  ;;  %v1516_v26 = vadd.f32 %v1515_v23, %v2728_v22 }
 0x1d3   : > { %v1519_v28 = vpop.f32.mrb[2].mxu0  ;;  %v1518_v29 = vadd.f32 %v1517_v25, %v2728_v22 }
 0x1d4   : > { %v1520_v30 = vadd.f32 %v1519_v28, %v2730_v24  ;;  %v1739_v31 = vmax.f32 %v1516_v26, 0.0  ;;  %v1521_v32 = vpop.f32.mrb[3].mxu0 }
 0x1d5   : > { %v1558_v33 = vpop.f32.mrb[0].mxu1  ;;  %v1740_v34 = vmax.f32 %v1518_v29, 0.0  ;;  %v1522_v27 = vadd.f32 %v1521_v32, %v2730_v24 }
 0x1d6   : > { %v1560_v6 = vpop.f32.mrb[1].mxu1  ;;  %v1751_v35 = vmax.f32 %v1520_v30, 0.0  ;;  %v1559_v36 = vadd.f32 %v1558_v33, %v2728_v22  ;;  %1763 = vst [vmem:[%s2737_s9] sm:$0xff] %v1739_v31 }
 0x1d7   : > { %v1562_v37 = vpop.f32.mrb[2].mxu1  ;;  %v1561_v38 = vadd.f32 %v1560_v6, %v2728_v22  ;;  %1764 = vst [vmem:[%s2737_s9 + $0x8] sm:$0xff] %v1740_v34  ;;  %v1752_v39 = vmax.f32 %v1522_v27, 0.0 }
 0x1d8   : > { %v1563_v40 = vadd.f32 %v1562_v37, %v2730_v24  ;;  %1766 = vst [vmem:[%s2737_s9 + $0x18] sm:$0xff] %v1751_v35  ;;  %v1741_v41 = vmax.f32 %v1559_v36, 0.0  ;;  %v1564_v42 = vpop.f32.mrb[3].mxu1 }
 0x1d9   : > { %v1742_v43 = vmax.f32 %v1561_v38, 0.0  ;;  %1767 = vst [vmem:[%s2737_s9 + $0x20] sm:$0xff] %v1752_v39  ;;  %v1565_v44 = vadd.f32 %v1564_v42, %v2730_v24 }
 0x1da   : > { %v1753_v45 = vmax.f32 %v1563_v40, 0.0  ;;  %1765 = vst [vmem:[%s2737_s9 + $0x10] sm:$0xff] %v1741_v41 }
 0x1db   : > { %1965 = vst [vmem:[%s2737_s9 + $0x30] sm:$0xff] %v1742_v43  ;;  %v1754_v46 = vmax.f32 %v1565_v44, 0.0 }
 0x1dc   : > { %1768 = vst [vmem:[%s2737_s9 + $0x28] sm:$0xff] %v1753_v45 }
 0x1dd   : > { %1968 = vst [vmem:[%s2737_s9 + $0x48] sm:$0xff] %v1754_v46  ;;  %v1601_v47 = vpop.f32.mrb[4].mxu0 }
 0x1de   : > { %v1602_v48 = vadd.f32 %v1601_v47, %v2728_v22  ;;  %v1603_v49 = vpop.f32.mrb[5].mxu0 }
 0x1df   : > { %v1604_v50 = vadd.f32 %v1603_v49, %v2728_v22  ;;  %v1605_v51 = vpop.f32.mrb[6].mxu0 }
 0x1e0   : > { %v1743_v52 = vmax.f32 %v1602_v48, 0.0  ;;  %v1606_v53 = vadd.f32 %v1605_v51, %v2730_v24  ;;  %v1607_v54 = vpop.f32.mrb[7].mxu0 }
 0x1e1   : > { %v1744_v55 = vmax.f32 %v1604_v50, 0.0  ;;  %v1608_v56 = vadd.f32 %v1607_v54, %v2730_v24 }
 0x1e2   : > { %1966 = vst [vmem:[%s2737_s9 + $0x38] sm:$0xff] %v1743_v52  ;;  %v1755_v57 = vmax.f32 %v1606_v53, 0.0 }
 0x1e3   : > { %1967 = vst [vmem:[%s2737_s9 + $0x40] sm:$0xff] %v1744_v55  ;;  %v1756_v58 = vmax.f32 %v1608_v56, 0.0 }
 0x1e4   : > { %1969 = vst [vmem:[%s2737_s9 + $0x50] sm:$0xff] %v1755_v57 }
 0x1e5   : > { %1970 = vst [vmem:[%s2737_s9 + $0x58] sm:$0xff] %v1756_v58 }
 0x1f5   : > { %v1644_v59 = vpop.f32.mrb[4].mxu1 }
 0x1f6   : > { %v1645_v60 = vadd.f32 %v1644_v59, %v2728_v22  ;;  %v1646_v61 = vpop.f32.mrb[5].mxu1 }
 0x1f7   : > { %v1647_v62 = vadd.f32 %v1646_v61, %v2728_v22  ;;  %v1648_v63 = vpop.f32.mrb[6].mxu1 }
 0x1f8   : > { %v1745_v0 = vmax.f32 %v1645_v60, 0.0  ;;  %v1649_v1 = vadd.f32 %v1648_v63, %v2730_v24  ;;  %v1650_v2 = vpop.f32.mrb[7].mxu1 }
 0x1f9   : > { %v1746_v3 = vmax.f32 %v1647_v62, 0.0  ;;  %v1651_v5 = vadd.f32 %v1650_v2, %v2730_v24 }
 0x1fa   : > { %1971 = vst [vmem:[%s2737_s9 + $0x60] sm:$0xff] %v1745_v0  ;;  %v1757_v7 = vmax.f32 %v1649_v1, 0.0 }
 0x1fb   : > { %1972 = vst [vmem:[%s2737_s9 + $0x68] sm:$0xff] %v1746_v3  ;;  %v1758_v8 = vmax.f32 %v1651_v5, 0.0 }
 0x1fc   : > { %1974 = vst [vmem:[%s2737_s9 + $0x78] sm:$0xff] %v1757_v7 }
 0x1fd   : > { %1975 = vst [vmem:[%s2737_s9 + $0x80] sm:$0xff] %v1758_v8 }
 0x215   : > { %v1687_v9 = vpop.f32.mrb[8].mxu0  ;;  %v1730_v10 = vpop.f32.mrb[8].mxu1 }
 0x216   : > { %v1688_v11 = vadd.f32 %v1687_v9, %v2728_v22  ;;  %v1731_v12 = vadd.f32 %v1730_v10, %v2728_v22  ;;  %v1689_v13 = vpop.f32.mrb[9].mxu0  ;;  %v1732_v14 = vpop.f32.mrb[9].mxu1 }
 0x217   : > { %v1690_v15 = vadd.f32 %v1689_v13, %v2728_v22  ;;  %v1733_v16 = vadd.f32 %v1732_v14, %v2728_v22  ;;  %v1691_v17 = vpop.f32.mrb[10].mxu0  ;;  %v1734_v18 = vpop.f32.mrb[10].mxu1 }
 0x218   : > { %v1747_v19 = vmax.f32 %v1688_v11, 0.0  ;;  %v1749_v4 = vmax.f32 %v1731_v12, 0.0  ;;  %v1692_v20 = vadd.f32 %v1691_v17, %v2730_v24  ;;  %v1735_v21 = vadd.f32 %v1734_v18, %v2730_v24  ;;  %v1693_v23 = vpop.f32.mrb[11].mxu0  ;;  %v1736_v25 = vpop.f32.mrb[11].mxu1 }
 0x219   : > { %v1748_v26 = vmax.f32 %v1690_v15, 0.0  ;;  %v1750_v28 = vmax.f32 %v1733_v16, 0.0  ;;  %v1694_v22 = vadd.f32 %v1693_v23, %v2730_v24  ;;  %v1737_v29 = vadd.f32 %v1736_v25, %v2730_v24 }
 0x21a   : > { %1973 = vst [vmem:[%s2737_s9 + $0x70] sm:$0xff] %v1747_v19  ;;  %1978 = vst [vmem:[%s2737_s9 + $0x98] sm:$0xff] %v1749_v4  ;;  %v1759_v30 = vmax.f32 %v1692_v20, 0.0  ;;  %v1761_v31 = vmax.f32 %v1735_v21, 0.0 }
 0x21b   : > { %1977 = vst [vmem:[%s2737_s9 + $0x90] sm:$0xff] %v1748_v26  ;;  %1979 = vst [vmem:[%s2737_s9 + $0xa0] sm:$0xff] %v1750_v28  ;;  %v1760_v32 = vmax.f32 %v1694_v22, 0.0  ;;  %v1762_v33 = vmax.f32 %v1737_v29, 0.0 }
 0x21c   : > { %1976 = vst [vmem:[%s2737_s9 + $0x88] sm:$0xff] %v1759_v30  ;;  %1981 = vst [vmem:[%s2737_s9 + $0xb0] sm:$0xff] %v1761_v31 }
 0x21d   : > { %1980 = vst [vmem:[%s2737_s9 + $0xa8] sm:$0xff] %v1760_v32  ;;  %1982 = vst [vmem:[%s2737_s9 + $0xb8] sm:$0xff] %v1762_v33 }
 0x21e   : > { %2175 = shalt.err (!%p2172_p2)
}
 0x21f   : > { %s2176_s20 = scalar_lea.hbm %s2781_s4, 3072  ;;  %s2180_s27 = scalar_lea.hbm %s2836_s3, 6144 }
 0x220   : > { %p2177_p4 = scmp.ne.s32.totalorder %s2781_s4, %s2176_s20  ;;  %p2181_p9 = scmp.lt.u32.totalorder %s2781_s4, %s2836_s3 }
 0x221   : > { %p2182_p1 = scmp.lt.u32.totalorder %s2180_s27, %s2176_s20  ;;  %p2184_p6 = scmp.lt.u32.totalorder %s2176_s20, %s2781_s4 }
 0x222   : > { %p2178_p5 = pnand %p2177_p4, %p2842_p11 }
 0x223   : > { %p2183_p3 = por %p2182_p1, %p2181_p9 }
 0x224   : > { %p2179_p7 = pneg %p2178_p5 }
 0x225   : > { %p2185_p12 = por %p2184_p6, %p2183_p3 }
 0x227   : > { %p2186_p13 = pnand %p2185_p12, %p2179_p7 }
 0x229   : > { %2189 = shalt.err (!%p2186_p13)
}
 0x22a   : > { %s2244_s8 = smov 384   ;;  %s2245_s9 = smov 24  }
 0x22b   : > { %1995 = dma.vmem_to_hbm [thread:$0]  (%p2842_p11), %s2785_s16, 3072, %s2781_s4, %s1791_s6, %s2244_s8, %s2244_s8, %s2245_s9  }
 0x22c PF: > { %s1820_s10 = sand.u32 1, %s2216_s12   ;;  %p2843_p8 = scmp.ne.s32.totalorder %s2840_s24, 0 }
 0x22d   : > { %p2844_p10 = scmp.ge.s32.totalorder %s2228_s15, 2  ;;  %s1821_s22 = scalar_lea.sflag [#allocation5], %s1820_s10 }
 0x22f   : > { %p2002_p0 = pnand %p2844_p10, %p2843_p8 }
 0x231   : > { %2211 = dma.done.wait (!%p2002_p0), %s1821_s22, 3072  }
 0x232   : > { %2213 = vsyncadd (!%p2002_p0), %s1821_s22, 4294964224  ;;  %p16_p2 = scmp.ge.s32.totalorder %s2291_s18, 4   ;;  %s2845_s12 = smov %s2220_s13 }
 0x233   : > { %s2846_s13 = smov %s2224_s14  ;;  %s2847_s14 = smov %s2303_s21 }
 0x234   : > { %s2848_s15 = smov %s2291_s18  ;;  %18 = sbr.rel (!%p16_p2) target bundleno = 5 (0x5), region = 83 }
 0x23b   :  { %1826 = vsyncpa [#allocation4], 1 }
 0x23c   :  { %1828 = vsyncpa [#allocation4 + $0x1], 1 }
 0x23d   :  { %1829 = vsyncpa [#allocation5], 1 }
 0x23e   :  { %1831 = vsyncpa [#allocation5 + $0x1], 1 }

</bundles_post_ra>
